<compile_context>
chip_gen: v5e
topology: v5e:2x2
jax: 0.10.0
libtpu: 0.0.40
codegen_flags: <defaults>
</compile_context>

<pallas_src>
import numpy as np
import jax
import jax.numpy as jnp
from jax import lax
from jax.experimental import pallas as pl
from jax.experimental.pallas import tpu as pltpu

NUM_HEADS = 8

# bf16 MXU operands + bf16 qkv intermediate (f32 accumulation everywhere).
MXU_DTYPE = jnp.bfloat16
QKV_DTYPE = jnp.bfloat16

# Explicit scoped-VMEM limit (tune per generation: v5e 16->raise, v6e/v7x 32).
VMEM_LIMIT_BYTES = 32 * 1024 * 1024


def _mxu(x):
    return x.astype(MXU_DTYPE)


# ----------------------------- Pallas kernels ------------------------------

def _make_qkv_dw_kernel(h, w):
    """qkv 1x1 conv (MXU) fused with the depthwise 3x3 conv (VPU).

    x_ref    : (1, h*w, c)     channels-last input pixels (f32)
    wqkv_ref : (c, 3c)         qkv weight, transposed (bf16)
    wdw_ref  : (9, 3c)         depthwise taps, row t = (ky*3 + kx) (f32)
    o_ref    : (1, 3c, h*w)    qkv in NCHW(-flat) layout (bf16)
    pad_ref  : (h+2, w+2, 3c)  VMEM halo scratch (f32)
    """
    def kernel(x_ref, wqkv_ref, wdw_ref, o_ref, pad_ref):
        c3 = o_ref.shape[1]
        hw = h * w
        # 1x1 conv as one MXU matmul (bf16 operands, f32 accumulation).
        y = jnp.dot(_mxu(x_ref[0]), wqkv_ref[...],
                    preferred_element_type=jnp.float32)          # (hw, 3c)

        # Halo padding in VMEM: zero only the 1-pixel border, interior is
        # fully overwritten every grid step (scratch persists across steps).
        zrow = jnp.zeros((1, w + 2, c3), jnp.float32)
        zcol = jnp.zeros((h, 1, c3), jnp.float32)
        pad_ref[0:1, :, :] = zrow
        pad_ref[h + 1:h + 2, :, :] = zrow
        pad_ref[1:h + 1, 0:1, :] = zcol
        pad_ref[1:h + 1, w + 1:w + 2, :] = zcol
        pad_ref[1:h + 1, 1:w + 1, :] = y.reshape(h, w, c3)

        # Depthwise 3x3: 3 w-shifted slab reads, ky shift is a free
        # leading-dim slice of the already-loaded slab.
        wv = wdw_ref[...]                                        # (9, 3c)
        acc = jnp.zeros((h, w, c3), jnp.float32)
        for kx in range(3):
            slab = pad_ref[:, kx:kx + w, :]                      # (h+2, w, 3c)
            for ky in range(3):
                t = ky * 3 + kx
                acc = acc + slab[ky:ky + h] * wv[t][None, None, :]

        # Single remaining layout materialization: the module's raw
        # reshape(b, hw, 3*heads, d) of the NCHW buffer requires the NCHW-flat
        # qkv buffer to exist, so we emit (3c, hw) here.
        o_ref[0] = acc.reshape(hw, c3).T.astype(o_ref.dtype)
    return kernel


def _make_conv_attn_kernel(h, w, c):
    """Fused: folded fc + grouped 3x3 dep_conv, channel attention (all heads,
    block-masked), project_out and the residual add.

    f_ref    : (1, h, w, 3c)   raw-NCHW reinterpretation of qkv (bf16)
    qkv_ref  : (1, 3c, hw)     qkv, NCHW-flat (bf16)
    wfT_ref  : (9, c, 3c)      folded (fc -> dep_conv) weight per tap (bf16)
    bias_ref : (c, hw)         precomputed border-aware bias plane (f32)
    wp_ref   : (c, c)          project_out weight (bf16)
    temp_ref : (c, 1)          per-channel temperature (f32)
    mask_ref : (c, c)          additive block-diagonal head mask (0 / -1e30)
    o_ref    : (1, c, hw)      final output, NCHW-flat (f32)
    pad_ref  : (h+2, w+2, 3c)  VMEM halo scratch (f32)
    """
    hw = h * w

    def kernel(f_ref, qkv_ref, wfT_ref, bias_ref, wp_ref, temp_ref, mask_ref,
               o_ref, pad_ref):
        K = f_ref.shape[3]                                       # 3c

        # ------------------ conv branch (fc folded into dep_conv) -----------
        zrow = jnp.zeros((1, w + 2, K), jnp.float32)
        zcol = jnp.zeros((h, 1, K), jnp.float32)
        pad_ref[0:1, :, :] = zrow
        pad_ref[h + 1:h + 2, :, :] = zrow
        pad_ref[1:h + 1, 0:1, :] = zcol
        pad_ref[1:h + 1, w + 1:w + 2, :] = zcol
        pad_ref[1:h + 1, 1:w + 1, :] = f_ref[0].astype(jnp.float32)

        conv = bias_ref[...]                                     # (c, hw) f32
        wfT = wfT_ref[...]                                       # (9, c, 3c)
        for kx in range(3):
            slab = pad_ref[:, kx:kx + w, :]                      # (h+2, w, 3c)
            for ky in range(3):
                t = ky * 3 + kx
                win = _mxu(slab[ky:ky + h].reshape(hw, K))       # (hw, 3c)
                # (c,3c) x (hw,3c)^T -> (c,hw): contraction on last dims only.
                conv = conv + lax.dot_general(
                    wfT[t], win, (((1,), (1,)), ((), ())),
                    preferred_element_type=jnp.float32)

        # ------------------ attention branch (all heads at once) ------------
        x = qkv_ref[0]                                           # (3c, hw) bf16
        q = x[0:c].astype(jnp.float32)
        k = x[c:2 * c].astype(jnp.float32)
        v = x[2 * c:3 * c]                                       # bf16 matmul rhs

        qn = q / jnp.maximum(
            jnp.sqrt(jnp.sum(q * q, axis=-1, keepdims=True)), 1e-12)
        kn = k / jnp.maximum(
            jnp.sqrt(jnp.sum(k * k, axis=-1, keepdims=True)), 1e-12)

        # (c, hw) x (c, hw)^T -> (c, c): one big MXU matmul for all heads.
        a = lax.dot_general(_mxu(qn), _mxu(kn), (((1,), (1,)), ((), ())),
                            preferred_element_type=jnp.float32)
        # Per-head temperature + additive block-diagonal mask (off-head -> 0).
        a = a * temp_ref[...] + mask_ref[...]
        a = a - jnp.max(a, axis=-1, keepdims=True)
        p = jnp.exp(a)
        p = p * pl.reciprocal(jnp.sum(p, axis=-1, keepdims=True), approx=True)

        attn = jnp.dot(_mxu(p), v, preferred_element_type=jnp.float32)  # (c, hw)
        proj = jnp.dot(wp_ref[...], _mxu(attn),
                       preferred_element_type=jnp.float32)              # (c, hw)

        o_ref[0] = (proj + conv).astype(o_ref.dtype)
    return kernel


# ------------------------------ pallas_call wrappers ------------------------

def pallas_qkv_dw(x_cl, wqkvT, wdw9, h, w):
    b, hw, c = x_cl.shape
    c3 = wqkvT.shape[1]
    return pl.pallas_call(
        _make_qkv_dw_kernel(h, w),
        out_shape=jax.ShapeDtypeStruct((b, c3, hw), QKV_DTYPE),
        grid=(b,),
        in_specs=[pl.BlockSpec((1, hw, c), lambda i: (i, 0, 0)),
                  pl.BlockSpec((c, c3), lambda i: (0, 0)),
                  pl.BlockSpec((9, c3), lambda i: (0, 0))],
        out_specs=pl.BlockSpec((1, c3, hw), lambda i: (i, 0, 0)),
        scratch_shapes=[pltpu.VMEM((h + 2, w + 2, c3), jnp.float32)],
        compiler_params=pltpu.CompilerParams(
            dimension_semantics=("parallel",),
            vmem_limit_bytes=VMEM_LIMIT_BYTES),
    )(x_cl, wqkvT, wdw9)


def pallas_conv_attn(qkv, f_view, wfT, bias_plane, w_proj, temp_col, mask_add,
                     h, w):
    b, c3, hw = qkv.shape
    c = c3 // 3
    return pl.pallas_call(
        _make_conv_attn_kernel(h, w, c),
        out_shape=jax.ShapeDtypeStruct((b, c, hw), jnp.float32),
        grid=(b,),
        in_specs=[pl.BlockSpec((1, h, w, c3), lambda i: (i, 0, 0, 0)),
                  pl.BlockSpec((1, c3, hw), lambda i: (i, 0, 0)),
                  pl.BlockSpec((9, c, c3), lambda i: (0, 0, 0)),
                  pl.BlockSpec((c, hw), lambda i: (0, 0)),
                  pl.BlockSpec((c, c), lambda i: (0, 0)),
                  pl.BlockSpec((c, 1), lambda i: (0, 0)),
                  pl.BlockSpec((c, c), lambda i: (0, 0))],
        out_specs=pl.BlockSpec((1, c, hw), lambda i: (i, 0, 0)),
        scratch_shapes=[pltpu.VMEM((h + 2, w + 2, c3), jnp.float32)],
        compiler_params=pltpu.CompilerParams(
            dimension_semantics=("parallel",),
            vmem_limit_bytes=VMEM_LIMIT_BYTES),
    )(f_view, qkv, wfT, bias_plane, w_proj, temp_col, mask_add)


# ------------------------- offline (per-call) packing -----------------------

def _prepare(params, h, w):
    """Cast / fold everything that does not depend on the data."""
    dim = params['w_qkv'].shape[1]
    d = dim // NUM_HEADS
    hw = h * w

    wqkvT = params['w_qkv'].T.astype(MXU_DTYPE)                    # (c, 3c)
    wdw9 = params['w_dw'].reshape(3 * dim, 9).T.astype(jnp.float32)  # (9, 3c)
    wfT = params['w_fold'].transpose(0, 2, 1).astype(MXU_DTYPE)      # (9, c, 3c)
    wp = params['w_proj'].astype(MXU_DTYPE)                          # (c, c)

    # Border-aware folded fc bias + dep_conv bias as one (c, hw) plane.
    ys = jnp.arange(h)
    xs = jnp.arange(w)
    valids = []
    for t in range(9):
        ky, kx = divmod(t, 3)
        vy = (ys + ky - 1 >= 0) & (ys + ky - 1 < h)
        vx = (xs + kx - 1 >= 0) & (xs + kx - 1 < w)
        valids.append((vy[:, None] & vx[None, :]).reshape(hw))
    valid = jnp.stack(valids).astype(jnp.float32)                    # (9, hw)
    bias_plane = (params['b_dep'][:, None] +
                  jnp.einsum('to,tp->op', params['b_fold'], valid)
                  ).astype(jnp.float32)                              # (c, hw)

    # Per-channel temperature column and additive block-diagonal head mask.
    temp_col = jnp.repeat(params['temperature'], d)[:, None].astype(jnp.float32)
    hid = jnp.arange(dim) // d
    mask_add = jnp.where(hid[:, None] == hid[None, :], 0.0, -1e30
                         ).astype(jnp.float32)                       # (c, c)

    return dict(wqkvT=wqkvT, wdw9=wdw9, wfT=wfT, bias_plane=bias_plane,
                wp=wp, temp_col=temp_col, mask_add=mask_add)


# ------------------------------ CAFM forward --------------------------------

def cafm_forward(x, params):
    """x: (b, c, h, w) NCHW float32 -> (b, c, h, w) NCHW float32."""
    b, c, h, w = x.shape
    hw = h * w
    pp = _prepare(params, h, w)

    # Single cheap layout op, on the smallest tensor (c channels).
    x_cl = x.transpose(0, 2, 3, 1).reshape(b, hw, c)

    # qkv 1x1 conv + depthwise 3x3 (fused) -> NCHW-flat (b, 3c, hw), bf16.
    qkv = pallas_qkv_dw(x_cl, pp['wqkvT'], pp['wdw9'], h, w)

    # The torch reshape chain is a raw row-major reinterpretation of the NCHW
    # buffer; this XLA-level reshape is a free metadata view of the HBM buffer.
    f_view = qkv.reshape(b, h, w, 3 * c)

    # Fused conv branch + channel attention + project_out + residual.
    out = pallas_conv_attn(qkv, f_view, pp['wfT'], pp['bias_plane'],
                           pp['wp'], pp['temp_col'], pp['mask_add'], h, w)
    return out.reshape(b, c, h, w)


# ------------------------------ parameters ----------------------------------

def init_params(key, dim, heads):
    d = dim // heads
    ks = jax.random.split(key, 7)
    s = 0.1
    w_qkv = jax.random.normal(ks[0], (3 * dim, dim), jnp.float32) * s
    # qkv_dwconv: depthwise 3x3x3; only the center depth slice contributes.
    w_dw = jax.random.normal(ks[1], (3 * dim, 3, 3), jnp.float32) * s
    w_proj = jax.random.normal(ks[2], (dim, dim), jnp.float32) * s
    w_fc = jax.random.normal(ks[3], (9, 3 * heads), jnp.float32) * s
    b_fc = jax.random.normal(ks[4], (9,), jnp.float32) * s
    # dep_conv: grouped 3x3x3 (groups = dim//heads); center depth slice only.
    w_dep = jax.random.normal(ks[5], (dim, 9, 3, 3), jnp.float32) * s
    b_dep = jax.random.normal(ks[6], (dim,), jnp.float32) * s
    temperature = jnp.ones((heads,), jnp.float32)

    # Fold the fc 1x1 conv into the grouped dep_conv weights (offline):
    #   w_fold[t, i*d + dd, o] = sum_j w_dep[o, j, ky, kx] * w_fc[j, i] * [dd == o//heads]
    #   b_fold[t, o]           = sum_j w_dep[o, j, ky, kx] * b_fc[j]
    w_comb = jnp.einsum('ojyx,jg->oyxg', w_dep, w_fc)             # (c, 3, 3, 3*heads)
    onehot = (jnp.arange(dim)[:, None] // heads
              == jnp.arange(d)[None, :]).astype(jnp.float32)      # (c, d)
    w_fold = jnp.einsum('oyxi,od->yxido', w_comb, onehot).reshape(9, 3 * dim, dim)
    b_fold = jnp.einsum('ojyx,j->yxo', w_dep, b_fc).reshape(9, dim)

    return dict(w_qkv=w_qkv, w_dw=w_dw, w_proj=w_proj, w_fc=w_fc, b_fc=b_fc,
                w_dep=w_dep, b_dep=b_dep, w_fold=w_fold, b_fold=b_fold,
                temperature=temperature)


# ------------------------------ pure-JAX reference ---------------------------

def cafm_reference(x, params):
    b, c, h, w = x.shape
    heads = NUM_HEADS
    d = c // heads
    hw = h * w
    qkv = jnp.einsum('bihw,oi->bohw', x, params['w_qkv'])
    qkv = lax.conv_general_dilated(
        qkv, params['w_dw'][:, None, :, :], (1, 1), ((1, 1), (1, 1)),
        dimension_numbers=('NCHW', 'OIHW', 'NCHW'), feature_group_count=3 * c)
    f_all = qkv.reshape(b, hw, 3 * heads, d).transpose(0, 2, 1, 3)
    f_all = jnp.einsum('bgpd,og->bopd', f_all, params['w_fc']) + \
        params['b_fc'][None, :, None, None]
    f_conv = f_all.transpose(0, 3, 1, 2).reshape(b, 9 * d, h, w)
    out_conv = lax.conv_general_dilated(
        f_conv, params['w_dep'], (1, 1), ((1, 1), (1, 1)),
        dimension_numbers=('NCHW', 'OIHW', 'NCHW'),
        feature_group_count=d) + params['b_dep'][None, :, None, None]
    q, k, v = jnp.split(qkv, 3, axis=1)
    q = q.reshape(b, heads, d, hw)
    k = k.reshape(b, heads, d, hw)
    v = v.reshape(b, heads, d, hw)
    qn = q / jnp.maximum(jnp.linalg.norm(q, axis=-1, keepdims=True), 1e-12)
    kn = k / jnp.maximum(jnp.linalg.norm(k, axis=-1, keepdims=True), 1e-12)
    attn = jnp.einsum('bhdl,bhel->bhde', qn, kn) * \
        params['temperature'][None, :, None, None]
    attn = jax.nn.softmax(attn, axis=-1)
    out = jnp.einsum('bhde,bhel->bhdl', attn, v).reshape(b, c, h, w)
    out = jnp.einsum('bihw,oi->bohw', out, params['w_proj'])
    return out + out_conv


# --------------------------------- main --------------------------------------

if __name__ == "__main__":
    B, DIM, H, W = 2, 16, 8, 8          # DIM must be divisible by num_heads=8
    key = jax.random.PRNGKey(0)
    kx, kp = jax.random.split(key)
    x = jax.random.normal(kx, (B, DIM, H, W), jnp.float32)
    params = init_params(kp, DIM, NUM_HEADS)

    fwd = jax.jit(cafm_forward)
    out = fwd(x, params)
    out = jax.block_until_ready(out)

    ref = cafm_reference(x, params)
    # bf16 MXU operands / bf16 qkv intermediate -> relaxed tolerance vs f32 ref.
    np.testing.assert_allclose(np.asarray(out), np.asarray(ref),
                               rtol=2e-2, atol=2e-2)
    print("KERNEL_OK")
</pallas_src>

<mosaic_0001>
module attributes {stable_mosaic.version = 11 : i64} {
  func.func @kernel(%arg0: i32, %arg1: memref<1x64x16xf32, #tpu.memory_space<vmem>>, %arg2: memref<16x48xbf16, #tpu.memory_space<vmem>>, %arg3: memref<9x48xf32, #tpu.memory_space<vmem>>, %arg4: memref<1x48x64xbf16, #tpu.memory_space<vmem>>, %arg5: memref<10x10x48xf32, #tpu.memory_space<vmem>>) attributes {dimension_semantics = [#tpu.dimension_semantics<parallel>], iteration_bounds = array<i64: 2>, scalar_prefetch = 0 : i64, scratch_operands = 1 : i64, tpu.core_type = #tpu.core_type<tc>, window_params = [{transform_indices = @transform_0, window_bounds = array<i64: 1, 64, 16>}, {pipeline_mode = #tpu.pipeline_mode<synchronous>, transform_indices = @transform_1, window_bounds = array<i64: 16, 48>}, {pipeline_mode = #tpu.pipeline_mode<synchronous>, transform_indices = @transform_2, window_bounds = array<i64: 9, 48>}, {transform_indices = @transform_3, window_bounds = array<i64: 1, 48, 64>}]} {
    %c0 = arith.constant 0 : index
    %c0_0 = arith.constant 0 : index
    %c0_1 = arith.constant 0 : index
    %0 = vector.load %arg1[%c0, %c0_0, %c0_1] : memref<1x64x16xf32, #tpu.memory_space<vmem>>, vector<1x64x16xf32>
    %1 = vector.shape_cast %0 : vector<1x64x16xf32> to vector<64x16xf32>
    %2 = arith.truncf %1 : vector<64x16xf32> to vector<64x16xbf16>
    %c0_2 = arith.constant 0 : index
    %c0_3 = arith.constant 0 : index
    %3 = vector.load %arg2[%c0_2, %c0_3] : memref<16x48xbf16, #tpu.memory_space<vmem>>, vector<16x48xbf16>
    %cst = arith.constant dense<0.000000e+00> : vector<64x48xf32>
    %4 = tpu.matmul %2, %3, %cst {dimension_numbers = #tpu.dot_dimension_numbers<[1], [0], [0], [1], [0, 0, 1, 1], [], []>} : vector<64x16xbf16>, vector<16x48xbf16>, vector<64x48xf32> -> vector<64x48xf32>
    %cst_4 = arith.constant 0.000000e+00 : f32
    %5 = vector.broadcast %cst_4 : f32 to vector<1x10x48xf32>
    %cst_5 = arith.constant 0.000000e+00 : f32
    %6 = vector.broadcast %cst_5 : f32 to vector<8x1x48xf32>
    %c0_6 = arith.constant 0 : index
    %c0_7 = arith.constant 0 : index
    %c0_8 = arith.constant 0 : index
    %7 = vector.load %arg5[%c0_6, %c0_7, %c0_8] : memref<10x10x48xf32, #tpu.memory_space<vmem>>, vector<1x10x48xf32>
    tpu.vector_store %arg5[%c0_6, %c0_7, %c0_8], %5 {strides = array<i32>} : memref<10x10x48xf32, #tpu.memory_space<vmem>>, vector<1x10x48xf32>,
    %c9 = arith.constant 9 : index
    %c0_9 = arith.constant 0 : index
    %c0_10 = arith.constant 0 : index
    %8 = vector.load %arg5[%c9, %c0_9, %c0_10] : memref<10x10x48xf32, #tpu.memory_space<vmem>>, vector<1x10x48xf32>
    tpu.vector_store %arg5[%c9, %c0_9, %c0_10], %5 {strides = array<i32>} : memref<10x10x48xf32, #tpu.memory_space<vmem>>, vector<1x10x48xf32>,
    %c1 = arith.constant 1 : index
    %c0_11 = arith.constant 0 : index
    %c0_12 = arith.constant 0 : index
    %9 = vector.load %arg5[%c1, %c0_11, %c0_12] : memref<10x10x48xf32, #tpu.memory_space<vmem>>, vector<8x1x48xf32>
    tpu.vector_store %arg5[%c1, %c0_11, %c0_12], %6 {strides = array<i32>} : memref<10x10x48xf32, #tpu.memory_space<vmem>>, vector<8x1x48xf32>,
    %c1_13 = arith.constant 1 : index
    %c9_14 = arith.constant 9 : index
    %c0_15 = arith.constant 0 : index
    %10 = vector.load %arg5[%c1_13, %c9_14, %c0_15] : memref<10x10x48xf32, #tpu.memory_space<vmem>>, vector<8x1x48xf32>
    tpu.vector_store %arg5[%c1_13, %c9_14, %c0_15], %6 {strides = array<i32>} : memref<10x10x48xf32, #tpu.memory_space<vmem>>, vector<8x1x48xf32>,
    %11 = vector.shape_cast %4 : vector<64x48xf32> to vector<8x8x48xf32>
    %c1_16 = arith.constant 1 : index
    %c1_17 = arith.constant 1 : index
    %c0_18 = arith.constant 0 : index
    %12 = vector.load %arg5[%c1_16, %c1_17, %c0_18] : memref<10x10x48xf32, #tpu.memory_space<vmem>>, vector<8x8x48xf32>
    tpu.vector_store %arg5[%c1_16, %c1_17, %c0_18], %11 {strides = array<i32>} : memref<10x10x48xf32, #tpu.memory_space<vmem>>, vector<8x8x48xf32>,
    %c0_19 = arith.constant 0 : index
    %c0_20 = arith.constant 0 : index
    %13 = vector.load %arg3[%c0_19, %c0_20] : memref<9x48xf32, #tpu.memory_space<vmem>>, vector<9x48xf32>
    %cst_21 = arith.constant 0.000000e+00 : f32
    %14 = vector.broadcast %cst_21 : f32 to vector<8x8x48xf32>
    %c0_22 = arith.constant 0 : index
    %c0_23 = arith.constant 0 : index
    %c0_24 = arith.constant 0 : index
    %15 = vector.load %arg5[%c0_22, %c0_23, %c0_24] : memref<10x10x48xf32, #tpu.memory_space<vmem>>, vector<10x8x48xf32>
    %16 = vector.extract_strided_slice %15 {offsets = [0, 0, 0], sizes = [8, 8, 48], strides = [1, 1, 1]} : vector<10x8x48xf32> to vector<8x8x48xf32>
    %17 = vector.extract_strided_slice %13 {offsets = [0, 0], sizes = [1, 48], strides = [1, 1]} : vector<9x48xf32> to vector<1x48xf32>
    %18 = vector.shape_cast %17 : vector<1x48xf32> to vector<48xf32>
    %19 = vector.shape_cast %18 : vector<48xf32> to vector<1x1x48xf32>
    %20 = vector.broadcast %19 : vector<1x1x48xf32> to vector<8x8x48xf32>
    %21 = arith.mulf %16, %20 : vector<8x8x48xf32>
    %22 = arith.addf %14, %21 : vector<8x8x48xf32>
    %23 = vector.extract_strided_slice %15 {offsets = [1, 0, 0], sizes = [8, 8, 48], strides = [1, 1, 1]} : vector<10x8x48xf32> to vector<8x8x48xf32>
    %24 = vector.extract_strided_slice %13 {offsets = [3, 0], sizes = [1, 48], strides = [1, 1]} : vector<9x48xf32> to vector<1x48xf32>
    %25 = vector.shape_cast %24 : vector<1x48xf32> to vector<48xf32>
    %26 = vector.shape_cast %25 : vector<48xf32> to vector<1x1x48xf32>
    %27 = vector.broadcast %26 : vector<1x1x48xf32> to vector<8x8x48xf32>
    %28 = arith.mulf %23, %27 : vector<8x8x48xf32>
    %29 = arith.addf %22, %28 : vector<8x8x48xf32>
    %30 = vector.extract_strided_slice %15 {offsets = [2, 0, 0], sizes = [8, 8, 48], strides = [1, 1, 1]} : vector<10x8x48xf32> to vector<8x8x48xf32>
    %31 = vector.extract_strided_slice %13 {offsets = [6, 0], sizes = [1, 48], strides = [1, 1]} : vector<9x48xf32> to vector<1x48xf32>
    %32 = vector.shape_cast %31 : vector<1x48xf32> to vector<48xf32>
    %33 = vector.shape_cast %32 : vector<48xf32> to vector<1x1x48xf32>
    %34 = vector.broadcast %33 : vector<1x1x48xf32> to vector<8x8x48xf32>
    %35 = arith.mulf %30, %34 : vector<8x8x48xf32>
    %36 = arith.addf %29, %35 : vector<8x8x48xf32>
    %c0_25 = arith.constant 0 : index
    %c1_26 = arith.constant 1 : index
    %c0_27 = arith.constant 0 : index
    %37 = vector.load %arg5[%c0_25, %c1_26, %c0_27] : memref<10x10x48xf32, #tpu.memory_space<vmem>>, vector<10x8x48xf32>
    %38 = vector.extract_strided_slice %37 {offsets = [0, 0, 0], sizes = [8, 8, 48], strides = [1, 1, 1]} : vector<10x8x48xf32> to vector<8x8x48xf32>
    %39 = vector.extract_strided_slice %13 {offsets = [1, 0], sizes = [1, 48], strides = [1, 1]} : vector<9x48xf32> to vector<1x48xf32>
    %40 = vector.shape_cast %39 : vector<1x48xf32> to vector<48xf32>
    %41 = vector.shape_cast %40 : vector<48xf32> to vector<1x1x48xf32>
    %42 = vector.broadcast %41 : vector<1x1x48xf32> to vector<8x8x48xf32>
    %43 = arith.mulf %38, %42 : vector<8x8x48xf32>
    %44 = arith.addf %36, %43 : vector<8x8x48xf32>
    %45 = vector.extract_strided_slice %37 {offsets = [1, 0, 0], sizes = [8, 8, 48], strides = [1, 1, 1]} : vector<10x8x48xf32> to vector<8x8x48xf32>
    %46 = vector.extract_strided_slice %13 {offsets = [4, 0], sizes = [1, 48], strides = [1, 1]} : vector<9x48xf32> to vector<1x48xf32>
    %47 = vector.shape_cast %46 : vector<1x48xf32> to vector<48xf32>
    %48 = vector.shape_cast %47 : vector<48xf32> to vector<1x1x48xf32>
    %49 = vector.broadcast %48 : vector<1x1x48xf32> to vector<8x8x48xf32>
    %50 = arith.mulf %45, %49 : vector<8x8x48xf32>
    %51 = arith.addf %44, %50 : vector<8x8x48xf32>
    %52 = vector.extract_strided_slice %37 {offsets = [2, 0, 0], sizes = [8, 8, 48], strides = [1, 1, 1]} : vector<10x8x48xf32> to vector<8x8x48xf32>
    %53 = vector.extract_strided_slice %13 {offsets = [7, 0], sizes = [1, 48], strides = [1, 1]} : vector<9x48xf32> to vector<1x48xf32>
    %54 = vector.shape_cast %53 : vector<1x48xf32> to vector<48xf32>
    %55 = vector.shape_cast %54 : vector<48xf32> to vector<1x1x48xf32>
    %56 = vector.broadcast %55 : vector<1x1x48xf32> to vector<8x8x48xf32>
    %57 = arith.mulf %52, %56 : vector<8x8x48xf32>
    %58 = arith.addf %51, %57 : vector<8x8x48xf32>
    %c0_28 = arith.constant 0 : index
    %c2 = arith.constant 2 : index
    %c0_29 = arith.constant 0 : index
    %59 = vector.load %arg5[%c0_28, %c2, %c0_29] : memref<10x10x48xf32, #tpu.memory_space<vmem>>, vector<10x8x48xf32>
    %60 = vector.extract_strided_slice %59 {offsets = [0, 0, 0], sizes = [8, 8, 48], strides = [1, 1, 1]} : vector<10x8x48xf32> to vector<8x8x48xf32>
    %61 = vector.extract_strided_slice %13 {offsets = [2, 0], sizes = [1, 48], strides = [1, 1]} : vector<9x48xf32> to vector<1x48xf32>
    %62 = vector.shape_cast %61 : vector<1x48xf32> to vector<48xf32>
    %63 = vector.shape_cast %62 : vector<48xf32> to vector<1x1x48xf32>
    %64 = vector.broadcast %63 : vector<1x1x48xf32> to vector<8x8x48xf32>
    %65 = arith.mulf %60, %64 : vector<8x8x48xf32>
    %66 = arith.addf %58, %65 : vector<8x8x48xf32>
    %67 = vector.extract_strided_slice %59 {offsets = [1, 0, 0], sizes = [8, 8, 48], strides = [1, 1, 1]} : vector<10x8x48xf32> to vector<8x8x48xf32>
    %68 = vector.extract_strided_slice %13 {offsets = [5, 0], sizes = [1, 48], strides = [1, 1]} : vector<9x48xf32> to vector<1x48xf32>
    %69 = vector.shape_cast %68 : vector<1x48xf32> to vector<48xf32>
    %70 = vector.shape_cast %69 : vector<48xf32> to vector<1x1x48xf32>
    %71 = vector.broadcast %70 : vector<1x1x48xf32> to vector<8x8x48xf32>
    %72 = arith.mulf %67, %71 : vector<8x8x48xf32>
    %73 = arith.addf %66, %72 : vector<8x8x48xf32>
    %74 = vector.extract_strided_slice %59 {offsets = [2, 0, 0], sizes = [8, 8, 48], strides = [1, 1, 1]} : vector<10x8x48xf32> to vector<8x8x48xf32>
    %75 = vector.extract_strided_slice %13 {offsets = [8, 0], sizes = [1, 48], strides = [1, 1]} : vector<9x48xf32> to vector<1x48xf32>
    %76 = vector.shape_cast %75 : vector<1x48xf32> to vector<48xf32>
    %77 = vector.shape_cast %76 : vector<48xf32> to vector<1x1x48xf32>
    %78 = vector.broadcast %77 : vector<1x1x48xf32> to vector<8x8x48xf32>
    %79 = arith.mulf %74, %78 : vector<8x8x48xf32>
    %80 = arith.addf %73, %79 : vector<8x8x48xf32>
    %81 = vector.shape_cast %80 : vector<8x8x48xf32> to vector<64x48xf32>
    %82 = tpu.transpose %81, [1, 0] : vector<64x48xf32> -> vector<48x64xf32>
    %83 = arith.truncf %82 : vector<48x64xf32> to vector<48x64xbf16>
    %c0_30 = arith.constant 0 : index
    %c0_31 = arith.constant 0 : index
    %c0_32 = arith.constant 0 : index
    %84 = vector.load %arg4[%c0_30, %c0_31, %c0_32] : memref<1x48x64xbf16, #tpu.memory_space<vmem>>, vector<1x48x64xbf16>
    %85 = vector.shape_cast %84 : vector<1x48x64xbf16> to vector<48x64xbf16>
    %86 = vector.shape_cast %83 : vector<48x64xbf16> to vector<1x48x64xbf16>
    tpu.vector_store %arg4[%c0_30, %c0_31, %c0_32], %86 {strides = array<i32>} : memref<1x48x64xbf16, #tpu.memory_space<vmem>>, vector<1x48x64xbf16>,
    return
  }
  func.func @transform_0(%arg0: i32) -> (i32, i32, i32) {
    %c0_i32 = arith.constant 0 : i32
    %c0_i32_0 = arith.constant 0 : i32
    %c0_i32_1 = arith.constant 0 : i32
    return %arg0, %c0_i32, %c0_i32_0 : i32, i32, i32
  }
  func.func @transform_1(%arg0: i32) -> (i32, i32) {
    %c0_i32 = arith.constant 0 : i32
    %c0_i32_0 = arith.constant 0 : i32
    %c0_i32_1 = arith.constant 0 : i32
    return %c0_i32, %c0_i32_0 : i32, i32
  }
  func.func @transform_2(%arg0: i32) -> (i32, i32) {
    %c0_i32 = arith.constant 0 : i32
    %c0_i32_0 = arith.constant 0 : i32
    %c0_i32_1 = arith.constant 0 : i32
    return %c0_i32, %c0_i32_0 : i32, i32
  }
  func.func @transform_3(%arg0: i32) -> (i32, i32, i32) {
    %c0_i32 = arith.constant 0 : i32
    %c0_i32_0 = arith.constant 0 : i32
    %c0_i32_1 = arith.constant 0 : i32
    return %arg0, %c0_i32, %c0_i32_0 : i32, i32, i32
  }
}

module attributes {stable_mosaic.version = 11 : i64} {
  func.func @kernel(%arg0: i32, %arg1: memref<1x8x8x48xbf16, #tpu.memory_space<vmem>>, %arg2: memref<1x48x64xbf16, #tpu.memory_space<vmem>>, %arg3: memref<9x16x48xbf16, #tpu.memory_space<vmem>>, %arg4: memref<16x64xf32, #tpu.memory_space<vmem>>, %arg5: memref<16x16xbf16, #tpu.memory_space<vmem>>, %arg6: memref<16x1xf32, #tpu.memory_space<vmem>>, %arg7: memref<16x16xf32, #tpu.memory_space<vmem>>, %arg8: memref<1x16x64xf32, #tpu.memory_space<vmem>>, %arg9: memref<10x10x48xf32, #tpu.memory_space<vmem>>) attributes {dimension_semantics = [#tpu.dimension_semantics<parallel>], iteration_bounds = array<i64: 2>, scalar_prefetch = 0 : i64, scratch_operands = 1 : i64, tpu.core_type = #tpu.core_type<tc>, window_params = [{transform_indices = @transform_0, window_bounds = array<i64: 1, 8, 8, 48>}, {transform_indices = @transform_1, window_bounds = array<i64: 1, 48, 64>}, {pipeline_mode = #tpu.pipeline_mode<synchronous>, transform_indices = @transform_2, window_bounds = array<i64: 9, 16, 48>}, {pipeline_mode = #tpu.pipeline_mode<synchronous>, transform_indices = @transform_3, window_bounds = array<i64: 16, 64>}, {pipeline_mode = #tpu.pipeline_mode<synchronous>, transform_indices = @transform_4, window_bounds = array<i64: 16, 16>}, {pipeline_mode = #tpu.pipeline_mode<synchronous>, transform_indices = @transform_5, window_bounds = array<i64: 16, 1>}, {pipeline_mode = #tpu.pipeline_mode<synchronous>, transform_indices = @transform_6, window_bounds = array<i64: 16, 16>}, {transform_indices = @transform_7, window_bounds = array<i64: 1, 16, 64>}]} {
    %cst = arith.constant 0.000000e+00 : f32
    %0 = vector.broadcast %cst : f32 to vector<1x10x48xf32>
    %cst_0 = arith.constant 0.000000e+00 : f32
    %1 = vector.broadcast %cst_0 : f32 to vector<8x1x48xf32>
    %c0 = arith.constant 0 : index
    %c0_1 = arith.constant 0 : index
    %c0_2 = arith.constant 0 : index
    %2 = vector.load %arg9[%c0, %c0_1, %c0_2] : memref<10x10x48xf32, #tpu.memory_space<vmem>>, vector<1x10x48xf32>
    tpu.vector_store %arg9[%c0, %c0_1, %c0_2], %0 {strides = array<i32>} : memref<10x10x48xf32, #tpu.memory_space<vmem>>, vector<1x10x48xf32>,
    %c9 = arith.constant 9 : index
    %c0_3 = arith.constant 0 : index
    %c0_4 = arith.constant 0 : index
    %3 = vector.load %arg9[%c9, %c0_3, %c0_4] : memref<10x10x48xf32, #tpu.memory_space<vmem>>, vector<1x10x48xf32>
    tpu.vector_store %arg9[%c9, %c0_3, %c0_4], %0 {strides = array<i32>} : memref<10x10x48xf32, #tpu.memory_space<vmem>>, vector<1x10x48xf32>,
    %c1 = arith.constant 1 : index
    %c0_5 = arith.constant 0 : index
    %c0_6 = arith.constant 0 : index
    %4 = vector.load %arg9[%c1, %c0_5, %c0_6] : memref<10x10x48xf32, #tpu.memory_space<vmem>>, vector<8x1x48xf32>
    tpu.vector_store %arg9[%c1, %c0_5, %c0_6], %1 {strides = array<i32>} : memref<10x10x48xf32, #tpu.memory_space<vmem>>, vector<8x1x48xf32>,
    %c1_7 = arith.constant 1 : index
    %c9_8 = arith.constant 9 : index
    %c0_9 = arith.constant 0 : index
    %5 = vector.load %arg9[%c1_7, %c9_8, %c0_9] : memref<10x10x48xf32, #tpu.memory_space<vmem>>, vector<8x1x48xf32>
    tpu.vector_store %arg9[%c1_7, %c9_8, %c0_9], %1 {strides = array<i32>} : memref<10x10x48xf32, #tpu.memory_space<vmem>>, vector<8x1x48xf32>,
    %c0_10 = arith.constant 0 : index
    %c0_11 = arith.constant 0 : index
    %c0_12 = arith.constant 0 : index
    %c0_13 = arith.constant 0 : index
    %6 = vector.load %arg1[%c0_10, %c0_11, %c0_12, %c0_13] : memref<1x8x8x48xbf16, #tpu.memory_space<vmem>>, vector<1x8x8x48xbf16>
    %7 = vector.shape_cast %6 : vector<1x8x8x48xbf16> to vector<8x8x48xbf16>
    %8 = arith.extf %7 : vector<8x8x48xbf16> to vector<8x8x48xf32>
    %c1_14 = arith.constant 1 : index
    %c1_15 = arith.constant 1 : index
    %c0_16 = arith.constant 0 : index
    %9 = vector.load %arg9[%c1_14, %c1_15, %c0_16] : memref<10x10x48xf32, #tpu.memory_space<vmem>>, vector<8x8x48xf32>
    tpu.vector_store %arg9[%c1_14, %c1_15, %c0_16], %8 {strides = array<i32>} : memref<10x10x48xf32, #tpu.memory_space<vmem>>, vector<8x8x48xf32>,
    %c0_17 = arith.constant 0 : index
    %c0_18 = arith.constant 0 : index
    %10 = vector.load %arg4[%c0_17, %c0_18] : memref<16x64xf32, #tpu.memory_space<vmem>>, vector<16x64xf32>
    %c0_19 = arith.constant 0 : index
    %c0_20 = arith.constant 0 : index
    %c0_21 = arith.constant 0 : index
    %11 = vector.load %arg3[%c0_19, %c0_20, %c0_21] : memref<9x16x48xbf16, #tpu.memory_space<vmem>>, vector<9x16x48xbf16>
    %c0_22 = arith.constant 0 : index
    %c0_23 = arith.constant 0 : index
    %c0_24 = arith.constant 0 : index
    %12 = vector.load %arg9[%c0_22, %c0_23, %c0_24] : memref<10x10x48xf32, #tpu.memory_space<vmem>>, vector<10x8x48xf32>
    %13 = vector.extract_strided_slice %12 {offsets = [0, 0, 0], sizes = [8, 8, 48], strides = [1, 1, 1]} : vector<10x8x48xf32> to vector<8x8x48xf32>
    %14 = vector.shape_cast %13 : vector<8x8x48xf32> to vector<64x48xf32>
    %15 = arith.truncf %14 : vector<64x48xf32> to vector<64x48xbf16>
    %16 = vector.extract_strided_slice %11 {offsets = [0, 0, 0], sizes = [1, 16, 48], strides = [1, 1, 1]} : vector<9x16x48xbf16> to vector<1x16x48xbf16>
    %17 = vector.shape_cast %16 : vector<1x16x48xbf16> to vector<16x48xbf16>
    %cst_25 = arith.constant dense<0.000000e+00> : vector<16x64xf32>
    %18 = tpu.matmul %17, %15, %cst_25 {dimension_numbers = #tpu.dot_dimension_numbers<[1], [1], [0], [0], [0, 0, 1, 0], [], []>} : vector<16x48xbf16>, vector<64x48xbf16>, vector<16x64xf32> -> vector<16x64xf32>
    %19 = arith.addf %10, %18 : vector<16x64xf32>
    %20 = vector.extract_strided_slice %12 {offsets = [1, 0, 0], sizes = [8, 8, 48], strides = [1, 1, 1]} : vector<10x8x48xf32> to vector<8x8x48xf32>
    %21 = vector.shape_cast %20 : vector<8x8x48xf32> to vector<64x48xf32>
    %22 = arith.truncf %21 : vector<64x48xf32> to vector<64x48xbf16>
    %23 = vector.extract_strided_slice %11 {offsets = [3, 0, 0], sizes = [1, 16, 48], strides = [1, 1, 1]} : vector<9x16x48xbf16> to vector<1x16x48xbf16>
    %24 = vector.shape_cast %23 : vector<1x16x48xbf16> to vector<16x48xbf16>
    %cst_26 = arith.constant dense<0.000000e+00> : vector<16x64xf32>
    %25 = tpu.matmul %24, %22, %cst_26 {dimension_numbers = #tpu.dot_dimension_numbers<[1], [1], [0], [0], [0, 0, 1, 0], [], []>} : vector<16x48xbf16>, vector<64x48xbf16>, vector<16x64xf32> -> vector<16x64xf32>
    %26 = arith.addf %19, %25 : vector<16x64xf32>
    %27 = vector.extract_strided_slice %12 {offsets = [2, 0, 0], sizes = [8, 8, 48], strides = [1, 1, 1]} : vector<10x8x48xf32> to vector<8x8x48xf32>
    %28 = vector.shape_cast %27 : vector<8x8x48xf32> to vector<64x48xf32>
    %29 = arith.truncf %28 : vector<64x48xf32> to vector<64x48xbf16>
    %30 = vector.extract_strided_slice %11 {offsets = [6, 0, 0], sizes = [1, 16, 48], strides = [1, 1, 1]} : vector<9x16x48xbf16> to vector<1x16x48xbf16>
    %31 = vector.shape_cast %30 : vector<1x16x48xbf16> to vector<16x48xbf16>
    %cst_27 = arith.constant dense<0.000000e+00> : vector<16x64xf32>
    %32 = tpu.matmul %31, %29, %cst_27 {dimension_numbers = #tpu.dot_dimension_numbers<[1], [1], [0], [0], [0, 0, 1, 0], [], []>} : vector<16x48xbf16>, vector<64x48xbf16>, vector<16x64xf32> -> vector<16x64xf32>
    %33 = arith.addf %26, %32 : vector<16x64xf32>
    %c0_28 = arith.constant 0 : index
    %c1_29 = arith.constant 1 : index
    %c0_30 = arith.constant 0 : index
    %34 = vector.load %arg9[%c0_28, %c1_29, %c0_30] : memref<10x10x48xf32, #tpu.memory_space<vmem>>, vector<10x8x48xf32>
    %35 = vector.extract_strided_slice %34 {offsets = [0, 0, 0], sizes = [8, 8, 48], strides = [1, 1, 1]} : vector<10x8x48xf32> to vector<8x8x48xf32>
    %36 = vector.shape_cast %35 : vector<8x8x48xf32> to vector<64x48xf32>
    %37 = arith.truncf %36 : vector<64x48xf32> to vector<64x48xbf16>
    %38 = vector.extract_strided_slice %11 {offsets = [1, 0, 0], sizes = [1, 16, 48], strides = [1, 1, 1]} : vector<9x16x48xbf16> to vector<1x16x48xbf16>
    %39 = vector.shape_cast %38 : vector<1x16x48xbf16> to vector<16x48xbf16>
    %cst_31 = arith.constant dense<0.000000e+00> : vector<16x64xf32>
    %40 = tpu.matmul %39, %37, %cst_31 {dimension_numbers = #tpu.dot_dimension_numbers<[1], [1], [0], [0], [0, 0, 1, 0], [], []>} : vector<16x48xbf16>, vector<64x48xbf16>, vector<16x64xf32> -> vector<16x64xf32>
    %41 = arith.addf %33, %40 : vector<16x64xf32>
    %42 = vector.extract_strided_slice %34 {offsets = [1, 0, 0], sizes = [8, 8, 48], strides = [1, 1, 1]} : vector<10x8x48xf32> to vector<8x8x48xf32>
    %43 = vector.shape_cast %42 : vector<8x8x48xf32> to vector<64x48xf32>
    %44 = arith.truncf %43 : vector<64x48xf32> to vector<64x48xbf16>
    %45 = vector.extract_strided_slice %11 {offsets = [4, 0, 0], sizes = [1, 16, 48], strides = [1, 1, 1]} : vector<9x16x48xbf16> to vector<1x16x48xbf16>
    %46 = vector.shape_cast %45 : vector<1x16x48xbf16> to vector<16x48xbf16>
    %cst_32 = arith.constant dense<0.000000e+00> : vector<16x64xf32>
    %47 = tpu.matmul %46, %44, %cst_32 {dimension_numbers = #tpu.dot_dimension_numbers<[1], [1], [0], [0], [0, 0, 1, 0], [], []>} : vector<16x48xbf16>, vector<64x48xbf16>, vector<16x64xf32> -> vector<16x64xf32>
    %48 = arith.addf %41, %47 : vector<16x64xf32>
    %49 = vector.extract_strided_slice %34 {offsets = [2, 0, 0], sizes = [8, 8, 48], strides = [1, 1, 1]} : vector<10x8x48xf32> to vector<8x8x48xf32>
    %50 = vector.shape_cast %49 : vector<8x8x48xf32> to vector<64x48xf32>
    %51 = arith.truncf %50 : vector<64x48xf32> to vector<64x48xbf16>
    %52 = vector.extract_strided_slice %11 {offsets = [7, 0, 0], sizes = [1, 16, 48], strides = [1, 1, 1]} : vector<9x16x48xbf16> to vector<1x16x48xbf16>
    %53 = vector.shape_cast %52 : vector<1x16x48xbf16> to vector<16x48xbf16>
    %cst_33 = arith.constant dense<0.000000e+00> : vector<16x64xf32>
    %54 = tpu.matmul %53, %51, %cst_33 {dimension_numbers = #tpu.dot_dimension_numbers<[1], [1], [0], [0], [0, 0, 1, 0], [], []>} : vector<16x48xbf16>, vector<64x48xbf16>, vector<16x64xf32> -> vector<16x64xf32>
    %55 = arith.addf %48, %54 : vector<16x64xf32>
    %c0_34 = arith.constant 0 : index
    %c2 = arith.constant 2 : index
    %c0_35 = arith.constant 0 : index
    %56 = vector.load %arg9[%c0_34, %c2, %c0_35] : memref<10x10x48xf32, #tpu.memory_space<vmem>>, vector<10x8x48xf32>
    %57 = vector.extract_strided_slice %56 {offsets = [0, 0, 0], sizes = [8, 8, 48], strides = [1, 1, 1]} : vector<10x8x48xf32> to vector<8x8x48xf32>
    %58 = vector.shape_cast %57 : vector<8x8x48xf32> to vector<64x48xf32>
    %59 = arith.truncf %58 : vector<64x48xf32> to vector<64x48xbf16>
    %60 = vector.extract_strided_slice %11 {offsets = [2, 0, 0], sizes = [1, 16, 48], strides = [1, 1, 1]} : vector<9x16x48xbf16> to vector<1x16x48xbf16>
    %61 = vector.shape_cast %60 : vector<1x16x48xbf16> to vector<16x48xbf16>
    %cst_36 = arith.constant dense<0.000000e+00> : vector<16x64xf32>
    %62 = tpu.matmul %61, %59, %cst_36 {dimension_numbers = #tpu.dot_dimension_numbers<[1], [1], [0], [0], [0, 0, 1, 0], [], []>} : vector<16x48xbf16>, vector<64x48xbf16>, vector<16x64xf32> -> vector<16x64xf32>
    %63 = arith.addf %55, %62 : vector<16x64xf32>
    %64 = vector.extract_strided_slice %56 {offsets = [1, 0, 0], sizes = [8, 8, 48], strides = [1, 1, 1]} : vector<10x8x48xf32> to vector<8x8x48xf32>
    %65 = vector.shape_cast %64 : vector<8x8x48xf32> to vector<64x48xf32>
    %66 = arith.truncf %65 : vector<64x48xf32> to vector<64x48xbf16>
    %67 = vector.extract_strided_slice %11 {offsets = [5, 0, 0], sizes = [1, 16, 48], strides = [1, 1, 1]} : vector<9x16x48xbf16> to vector<1x16x48xbf16>
    %68 = vector.shape_cast %67 : vector<1x16x48xbf16> to vector<16x48xbf16>
    %cst_37 = arith.constant dense<0.000000e+00> : vector<16x64xf32>
    %69 = tpu.matmul %68, %66, %cst_37 {dimension_numbers = #tpu.dot_dimension_numbers<[1], [1], [0], [0], [0, 0, 1, 0], [], []>} : vector<16x48xbf16>, vector<64x48xbf16>, vector<16x64xf32> -> vector<16x64xf32>
    %70 = arith.addf %63, %69 : vector<16x64xf32>
    %71 = vector.extract_strided_slice %56 {offsets = [2, 0, 0], sizes = [8, 8, 48], strides = [1, 1, 1]} : vector<10x8x48xf32> to vector<8x8x48xf32>
    %72 = vector.shape_cast %71 : vector<8x8x48xf32> to vector<64x48xf32>
    %73 = arith.truncf %72 : vector<64x48xf32> to vector<64x48xbf16>
    %74 = vector.extract_strided_slice %11 {offsets = [8, 0, 0], sizes = [1, 16, 48], strides = [1, 1, 1]} : vector<9x16x48xbf16> to vector<1x16x48xbf16>
    %75 = vector.shape_cast %74 : vector<1x16x48xbf16> to vector<16x48xbf16>
    %cst_38 = arith.constant dense<0.000000e+00> : vector<16x64xf32>
    %76 = tpu.matmul %75, %73, %cst_38 {dimension_numbers = #tpu.dot_dimension_numbers<[1], [1], [0], [0], [0, 0, 1, 0], [], []>} : vector<16x48xbf16>, vector<64x48xbf16>, vector<16x64xf32> -> vector<16x64xf32>
    %77 = arith.addf %70, %76 : vector<16x64xf32>
    %c0_39 = arith.constant 0 : index
    %c0_40 = arith.constant 0 : index
    %c0_41 = arith.constant 0 : index
    %78 = vector.load %arg2[%c0_39, %c0_40, %c0_41] : memref<1x48x64xbf16, #tpu.memory_space<vmem>>, vector<1x48x64xbf16>
    %79 = vector.shape_cast %78 : vector<1x48x64xbf16> to vector<48x64xbf16>
    %80 = vector.extract_strided_slice %79 {offsets = [0, 0], sizes = [16, 64], strides = [1, 1]} : vector<48x64xbf16> to vector<16x64xbf16>
    %81 = arith.extf %80 : vector<16x64xbf16> to vector<16x64xf32>
    %82 = vector.extract_strided_slice %79 {offsets = [16, 0], sizes = [16, 64], strides = [1, 1]} : vector<48x64xbf16> to vector<16x64xbf16>
    %83 = arith.extf %82 : vector<16x64xbf16> to vector<16x64xf32>
    %84 = vector.extract_strided_slice %79 {offsets = [32, 0], sizes = [16, 64], strides = [1, 1]} : vector<48x64xbf16> to vector<16x64xbf16>
    %85 = arith.mulf %81, %81 : vector<16x64xf32>
    %cst_42 = arith.constant dense<0.000000e+00> : vector<16xf32>
    %86 = vector.multi_reduction <add>, %85, %cst_42 [1] : vector<16x64xf32> to vector<16xf32>
    %87 = vector.shape_cast %86 : vector<16xf32> to vector<16x1xf32>
    %88 = math.sqrt %87 : vector<16x1xf32>
    %cst_43 = arith.constant 9.99999996E-13 : f32
    %89 = vector.broadcast %cst_43 : f32 to vector<16x1xf32>
    %90 = arith.maximumf %88, %89 : vector<16x1xf32>
    %91 = vector.broadcast %90 : vector<16x1xf32> to vector<16x64xf32>
    %92 = arith.divf %81, %91 : vector<16x64xf32>
    %93 = arith.mulf %83, %83 : vector<16x64xf32>
    %cst_44 = arith.constant dense<0.000000e+00> : vector<16xf32>
    %94 = vector.multi_reduction <add>, %93, %cst_44 [1] : vector<16x64xf32> to vector<16xf32>
    %95 = vector.shape_cast %94 : vector<16xf32> to vector<16x1xf32>
    %96 = math.sqrt %95 : vector<16x1xf32>
    %cst_45 = arith.constant 9.99999996E-13 : f32
    %97 = vector.broadcast %cst_45 : f32 to vector<16x1xf32>
    %98 = arith.maximumf %96, %97 : vector<16x1xf32>
    %99 = vector.broadcast %98 : vector<16x1xf32> to vector<16x64xf32>
    %100 = arith.divf %83, %99 : vector<16x64xf32>
    %101 = arith.truncf %92 : vector<16x64xf32> to vector<16x64xbf16>
    %102 = arith.truncf %100 : vector<16x64xf32> to vector<16x64xbf16>
    %cst_46 = arith.constant dense<0.000000e+00> : vector<16x16xf32>
    %103 = tpu.matmul %101, %102, %cst_46 {dimension_numbers = #tpu.dot_dimension_numbers<[1], [1], [0], [0], [0, 0, 1, 0], [], []>} : vector<16x64xbf16>, vector<16x64xbf16>, vector<16x16xf32> -> vector<16x16xf32>
    %c0_47 = arith.constant 0 : index
    %c0_48 = arith.constant 0 : index
    %104 = vector.load %arg6[%c0_47, %c0_48] : memref<16x1xf32, #tpu.memory_space<vmem>>, vector<16x1xf32>
    %105 = vector.broadcast %104 : vector<16x1xf32> to vector<16x16xf32>
    %106 = arith.mulf %103, %105 : vector<16x16xf32>
    %c0_49 = arith.constant 0 : index
    %c0_50 = arith.constant 0 : index
    %107 = vector.load %arg7[%c0_49, %c0_50] : memref<16x16xf32, #tpu.memory_space<vmem>>, vector<16x16xf32>
    %108 = arith.addf %106, %107 : vector<16x16xf32>
    %cst_51 = arith.constant dense<0xFF800000> : vector<16xf32>
    %109 = vector.multi_reduction <maximumf>, %108, %cst_51 [1] : vector<16x16xf32> to vector<16xf32>
    %110 = vector.shape_cast %109 : vector<16xf32> to vector<16x1xf32>
    %111 = vector.broadcast %110 : vector<16x1xf32> to vector<16x16xf32>
    %112 = arith.subf %108, %111 : vector<16x16xf32>
    %113 = math.exp %112 : vector<16x16xf32>
    %cst_52 = arith.constant dense<0.000000e+00> : vector<16xf32>
    %114 = vector.multi_reduction <add>, %113, %cst_52 [1] : vector<16x16xf32> to vector<16xf32>
    %115 = vector.shape_cast %114 : vector<16xf32> to vector<16x1xf32>
    %116 = tpu.reciprocal %115 {approx = true} : vector<16x1xf32> -> vector<16x1xf32>
    %117 = vector.broadcast %116 : vector<16x1xf32> to vector<16x16xf32>
    %118 = arith.mulf %113, %117 : vector<16x16xf32>
    %119 = arith.truncf %118 : vector<16x16xf32> to vector<16x16xbf16>
    %cst_53 = arith.constant dense<0.000000e+00> : vector<16x64xf32>
    %120 = tpu.matmul %119, %84, %cst_53 {dimension_numbers = #tpu.dot_dimension_numbers<[1], [0], [0], [1], [0, 0, 1, 1], [], []>} : vector<16x16xbf16>, vector<16x64xbf16>, vector<16x64xf32> -> vector<16x64xf32>
    %c0_54 = arith.constant 0 : index
    %c0_55 = arith.constant 0 : index
    %121 = vector.load %arg5[%c0_54, %c0_55] : memref<16x16xbf16, #tpu.memory_space<vmem>>, vector<16x16xbf16>
    %122 = arith.truncf %120 : vector<16x64xf32> to vector<16x64xbf16>
    %cst_56 = arith.constant dense<0.000000e+00> : vector<16x64xf32>
    %123 = tpu.matmul %121, %122, %cst_56 {dimension_numbers = #tpu.dot_dimension_numbers<[1], [0], [0], [1], [0, 0, 1, 1], [], []>} : vector<16x16xbf16>, vector<16x64xbf16>, vector<16x64xf32> -> vector<16x64xf32>
    %124 = arith.addf %123, %77 : vector<16x64xf32>
    %c0_57 = arith.constant 0 : index
    %c0_58 = arith.constant 0 : index
    %c0_59 = arith.constant 0 : index
    %125 = vector.load %arg8[%c0_57, %c0_58, %c0_59] : memref<1x16x64xf32, #tpu.memory_space<vmem>>, vector<1x16x64xf32>
    %126 = vector.shape_cast %125 : vector<1x16x64xf32> to vector<16x64xf32>
    %127 = vector.shape_cast %124 : vector<16x64xf32> to vector<1x16x64xf32>
    tpu.vector_store %arg8[%c0_57, %c0_58, %c0_59], %127 {strides = array<i32>} : memref<1x16x64xf32, #tpu.memory_space<vmem>>, vector<1x16x64xf32>,
    return
  }
  func.func @transform_0(%arg0: i32) -> (i32, i32, i32, i32) {
    %c0_i32 = arith.constant 0 : i32
    %c0_i32_0 = arith.constant 0 : i32
    %c0_i32_1 = arith.constant 0 : i32
    %c0_i32_2 = arith.constant 0 : i32
    return %arg0, %c0_i32, %c0_i32_0, %c0_i32_1 : i32, i32, i32, i32
  }
  func.func @transform_1(%arg0: i32) -> (i32, i32, i32) {
    %c0_i32 = arith.constant 0 : i32
    %c0_i32_0 = arith.constant 0 : i32
    %c0_i32_1 = arith.constant 0 : i32
    return %arg0, %c0_i32, %c0_i32_0 : i32, i32, i32
  }
  func.func @transform_2(%arg0: i32) -> (i32, i32, i32) {
    %c0_i32 = arith.constant 0 : i32
    %c0_i32_0 = arith.constant 0 : i32
    %c0_i32_1 = arith.constant 0 : i32
    %c0_i32_2 = arith.constant 0 : i32
    return %c0_i32, %c0_i32_0, %c0_i32_1 : i32, i32, i32
  }
  func.func @transform_3(%arg0: i32) -> (i32, i32) {
    %c0_i32 = arith.constant 0 : i32
    %c0_i32_0 = arith.constant 0 : i32
    %c0_i32_1 = arith.constant 0 : i32
    return %c0_i32, %c0_i32_0 : i32, i32
  }
  func.func @transform_4(%arg0: i32) -> (i32, i32) {
    %c0_i32 = arith.constant 0 : i32
    %c0_i32_0 = arith.constant 0 : i32
    %c0_i32_1 = arith.constant 0 : i32
    return %c0_i32, %c0_i32_0 : i32, i32
  }
  func.func @transform_5(%arg0: i32) -> (i32, i32) {
    %c0_i32 = arith.constant 0 : i32
    %c0_i32_0 = arith.constant 0 : i32
    %c0_i32_1 = arith.constant 0 : i32
    return %c0_i32, %c0_i32_0 : i32, i32
  }
  func.func @transform_6(%arg0: i32) -> (i32, i32) {
    %c0_i32 = arith.constant 0 : i32
    %c0_i32_0 = arith.constant 0 : i32
    %c0_i32_1 = arith.constant 0 : i32
    return %c0_i32, %c0_i32_0 : i32, i32
  }
  func.func @transform_7(%arg0: i32) -> (i32, i32, i32) {
    %c0_i32 = arith.constant 0 : i32
    %c0_i32_0 = arith.constant 0 : i32
    %c0_i32_1 = arith.constant 0 : i32
    return %arg0, %c0_i32, %c0_i32_0 : i32, i32, i32
  }
}

</mosaic_0001>

<bundles_post_ra>
// kernel: cafm_forward.2
= control target key start
LH: loop header
LB: loop body
LE: loop exit
PB: predicated region body
PF: predicated region fallthrough
CT: control target
= control target key end

     0   :  { %s615_s12 = smov 0   ;;  %s767_s0 = inlined_call_operand.vmem [shape: f32[2,64,16], index: 0, kind: input, shape index: {}]   ;;  %s768_s1 = inlined_call_operand.vmem [shape: bf16[16,48], index: 1, kind: input, shape index: {}]   ;;  %s769_s2 = inlined_call_operand.vmem [shape: f32[9,48], index: 2, kind: input, shape index: {}]   ;;  %s770_s3 = inlined_call_operand.vmem [shape: bf16[2,48,64], index: 3, kind: output, shape index: {}]  }
   0x1 LB: > { %s552_s13 = sadd.s32 4294967295, %s592_s12   ;;  %p556_p0 = scmp.ge.s32.totalorder %s592_s12, 1  ;;  %s592_s12 = sphi %s615_s12, %s13_s12  }
   0x2   : > { %p137_p1 = scmp.lt.s32.totalorder %s592_s12, 3 }
   0x4   : > { %p138_p2 = pnand %p556_p0, %p137_p1 }
   0x5   : > { %p161_p3 = scmp.lt.s32.totalorder (!%p138_p2), %s552_s13, 1 }
   0x6   : > { %141 = sbr.rel (%p138_p2) target bundleno = 383 (0x17f), region = 32 }
   0xb   : > { %v571_v0 = vld [vmem:[%s768_s1] sm:$0xff]  ;;  %s772_s13 = smov (!%p161_p3, %s552_s13), 1  ;;  %vm192_vm0 = vcmask 130048   ;;  %vm234_vm1 = vcmask 392192   ;;  %vm242_vm2 = vcmask 385024   ;;  %v594_v13 = vmov 0.0  }
   0xc   : > { %212 = vmatpush.bf16.msra.mxu0 %v571_v0  ;;  %572 = vmatpush.bf16.msra.mxu1 %v571_v0  ;;  %s570_s16 = sshll.u32 %s772_s13, 6  ;;  %235 = vst.msk [vmem:[#allocation2] sm:$0xff] %vm234_vm1, %v594_v13  ;;  %vm236_vm3 = vcmask 386048   ;;  %v267_v16 = vld [vmem:[%s769_s2] sm:$0xff]  ;;  %s575_s24 = smul.u32 24, %s772_s13  ;;  %vm490_vm4 = vcmask 519168  }
   0xd   : > { %573 = vmatpush.bf16.msra.mxu2 %v571_v0  ;;  %574 = vmatpush.bf16.msra.mxu3 %v571_v0  ;;  %s165_s19 = scalar_lea.vmem %s767_s0, %s570_s16  ;;  %243 = vst.msk [vmem:[#allocation2 + $0x10] sm:$0x1] %vm242_vm2, %v594_v13  ;;  %v657_v21 = vperm.slane %v267_v16, 0  ;;  %v659_v22 = vperm.slane %v267_v16, 3  ;;  %v665_v27 = vperm.slane %v267_v16, 6  ;;  %v667_v31 = vperm.slane %v267_v16, 1 }
   0xe   : > { %v172_v1 = vld [vmem:[%s165_s19] sm:$0xff]  ;;  %v173_v2 = vld [vmem:[%s165_s19 + $0x8] sm:$0xff]  ;;  %v174_v3 = vld [vmem:[%s165_s19 + $0x10] sm:$0xff]  ;;  %244 = vst.msk [vmem:[#allocation2 + $0x20] sm:$0x1] %vm242_vm2, %v594_v13  ;;  %v670_v34 = vperm.slane %v267_v16, 4  ;;  %s170_s27 = scalar_lea.vmem %s770_s3, %s575_s24 }
   0xf   : > { %v180_v4 = vpack.c.bf16 %v173_v2, %v172_v1  ;;  %v175_v5 = vld [vmem:[%s165_s19 + $0x18] sm:$0xff]  ;;  %v176_v6 = vld [vmem:[%s165_s19 + $0x20] sm:$0xff]  ;;  %v177_v7 = vld [vmem:[%s165_s19 + $0x28] sm:$0xff]  ;;  %251 = vst.msk [vmem:[#allocation2 + $0x19] sm:$0x1] %vm242_vm2, %v594_v13  ;;  %v679_v45 = vperm.slane %v267_v16, 7 }
  0x10   : > { %v181_v8 = vpack.c.bf16 %v175_v5, %v174_v3  ;;  %v182_v9 = vpack.c.bf16 %v177_v7, %v176_v6  ;;  %v178_v10 = vld [vmem:[%s165_s19 + $0x30] sm:$0xff]  ;;  %v179_v11 = vld [vmem:[%s165_s19 + $0x38] sm:$0xff]  ;;  %252 = vst.msk [vmem:[#allocation2 + $0x29] sm:$0x1] %vm242_vm2, %v594_v13  ;;  %v683_v50 = vperm.slane %v267_v16, 2  ;;  %v686_v54 = vperm.slane %v267_v16, 5 }
  0x11   : > { %564 = vmatmul.msk.bf16.vlgmr.msra.gmra.mxu0 %vm192_vm0, %v180_v4  ;;  %v183_v12 = vpack.c.bf16 %v179_v11, %v178_v10  ;;  %239 = vst.msk [vmem:[#allocation2 + $0x90] sm:$0xff] %vm234_vm1, %v594_v13 }
  0x12   : > { %565 = vmatmul.msk.bf16.vlgmr.msra.gmra.mxu1 %vm192_vm0, %v181_v8  ;;  %566 = vmatmul.msk.bf16.vlgmr.msra.gmra.mxu2 %vm192_vm0, %v182_v9  ;;  %245 = vst.msk [vmem:[#allocation2 + $0x30] sm:$0x1] %vm242_vm2, %v594_v13  ;;  %v699_v8 = vld [vmem:[%s769_s2 + $0x8] ss:$0 sm:$0xff] }
  0x13   : > { %567 = vmatmul.msk.bf16.vlgmr.msra.gmra.mxu3 %vm192_vm0, %v183_v12  ;;  %246 = vst.msk [vmem:[#allocation2 + $0x40] sm:$0x1] %vm242_vm2, %v594_v13  ;;  %v269_v23 = vld [vmem:[#allocation2] sm:$0xff] }
  0x14   : > { %247 = vst.msk [vmem:[#allocation2 + $0x50] sm:$0x1] %vm242_vm2, %v594_v13  ;;  %v280_v25 = vmul.f32 %v657_v21, %v269_v23 }
  0x15   : > { %248 = vst.msk [vmem:[#allocation2 + $0x60] sm:$0x1] %vm242_vm2, %v594_v13 }
  0x16   : > { %237 = vst.msk [vmem:[#allocation2 + $0x8] sm:$0x3] %vm236_vm3, %v594_v13 }
  0x17   : > { %240 = vst.msk [vmem:[#allocation2 + $0x98] sm:$0x3] %vm236_vm3, %v594_v13 }
  0x18   : > { %249 = vst.msk [vmem:[#allocation2 + $0x70] sm:$0x1] %vm242_vm2, %v594_v13 }
  0x19   : > { %250 = vst.msk [vmem:[#allocation2 + $0x80] sm:$0x1] %vm242_vm2, %v594_v13 }
  0x1a   : > { %253 = vst.msk [vmem:[#allocation2 + $0x39] sm:$0x1] %vm242_vm2, %v594_v13 }
  0x1b   : > { %254 = vst.msk [vmem:[#allocation2 + $0x49] sm:$0x1] %vm242_vm2, %v594_v13 }
  0x1c   : > { %255 = vst.msk [vmem:[#allocation2 + $0x59] sm:$0x1] %vm242_vm2, %v594_v13 }
  0x1d   : > { %256 = vst.msk [vmem:[#allocation2 + $0x69] sm:$0x1] %vm242_vm2, %v594_v13  ;;  %v330_v28 = vld [vmem:[#allocation2 + $0x1] sm:$0xff] }
  0x1e   : > { %257 = vst.msk [vmem:[#allocation2 + $0x79] sm:$0x1] %vm242_vm2, %v594_v13  ;;  %v341_v37 = vmul.f32 %v667_v31, %v330_v28  ;;  %v391_v46 = vld [vmem:[#allocation2 + $0x2] sm:$0xff] }
  0x1f   : > { %258 = vst.msk [vmem:[#allocation2 + $0x89] sm:$0x1] %vm242_vm2, %v594_v13  ;;  %v402_v57 = vmul.f32 %v683_v50, %v391_v46 }
  0x8e   : > { %v214_v14 = vpop.f32.mrf.mxu0 }
  0x8f   : > { %259 = vst.msk [vmem:[#allocation2 + $0x11] sm:$0xff] %vm234_vm1, %v214_v14  ;;  %v219_v15 = vpop.f32.mrf.mxu1 }
  0x90   : > { %261 = vst.msk [vmem:[#allocation2 + $0x31] sm:$0xff] %vm234_vm1, %v219_v15 }
  0x95   : > { %v224_v17 = vpop.f32.mrf.mxu2 }
  0x96   : > { %263 = vst.msk [vmem:[#allocation2 + $0x51] sm:$0xff] %vm234_vm1, %v224_v17  ;;  %v216_v18 = vpop.f32.mrf.mxu0  ;;  %v229_v19 = vpop.f32.mrf.mxu3  ;;  %v270_v24 = vld [vmem:[#allocation2 + $0x10] sm:$0xff] }
  0x97   : > { %260 = vst.msk [vmem:[#allocation2 + $0x21] sm:$0xff] %vm234_vm1, %v216_v18  ;;  %v221_v20 = vpop.f32.mrf.mxu1  ;;  %v297_v26 = vmul.f32 %v659_v22, %v270_v24  ;;  %v272_v29 = vld [vmem:[#allocation2 + $0x30] sm:$0xff]  ;;  %v281_v40 = vmul.f32 %v657_v21, %v270_v24 }
  0x98   : > { %262 = vst.msk [vmem:[#allocation2 + $0x41] sm:$0xff] %vm234_vm1, %v221_v20  ;;  %v299_v38 = vmul.f32 %v659_v22, %v272_v29  ;;  %v331_v39 = vld [vmem:[#allocation2 + $0x11] sm:$0xff]  ;;  %v315_v42 = vmul.f32 %v665_v27, %v272_v29  ;;  %v283_v59 = vmul.f32 %v657_v21, %v272_v29 }
  0x99   : > { %265 = vst.msk [vmem:[#allocation2 + $0x71] sm:$0xff] %vm234_vm1, %v229_v19  ;;  %v305_v35 = vadd.f32 %v297_v26, %v280_v25  ;;  %v358_v53 = vmul.f32 %v670_v34, %v331_v39  ;;  %v342_v56 = vmul.f32 %v667_v31, %v331_v39  ;;  %v392_v62 = vld [vmem:[#allocation2 + $0x12] sm:$0xff] }
  0x9a   : > { %v333_v63 = vld [vmem:[#allocation2 + $0x31] sm:$0xff]  ;;  %v419_v10 = vmul.f32 %v686_v54, %v392_v62  ;;  %v403_v18 = vmul.f32 %v683_v50, %v392_v62 }
  0x9b   : > { %v376_v4 = vmul.f32 %v679_v45, %v333_v63  ;;  %v360_v12 = vmul.f32 %v670_v34, %v333_v63  ;;  %v344_v25 = vmul.f32 %v667_v31, %v333_v63 }
  0x9d   : > { %v226_v30 = vpop.f32.mrf.mxu2  ;;  %v274_v5 = vld [vmem:[#allocation2 + $0x50] sm:$0xff] }
  0x9e   : > { %264 = vst.msk [vmem:[#allocation2 + $0x61] sm:$0xff] %vm234_vm1, %v226_v30  ;;  %v231_v32 = vpop.f32.mrf.mxu3  ;;  %v271_v33 = vld [vmem:[#allocation2 + $0x20] sm:$0xff]  ;;  %v317_v16 = vmul.f32 %v665_v27, %v274_v5  ;;  %v301_v28 = vmul.f32 %v659_v22, %v274_v5 }
  0x9f   : > { %266 = vst.msk [vmem:[#allocation2 + $0x81] sm:$0xff] %vm234_vm1, %v231_v32  ;;  %v314_v36 = vmul.f32 %v665_v27, %v271_v33  ;;  %v298_v41 = vmul.f32 %v659_v22, %v271_v33  ;;  %v273_v43 = vld [vmem:[#allocation2 + $0x40] sm:$0xff]  ;;  %v282_v47 = vmul.f32 %v657_v21, %v271_v33 }
  0xa0   : > { %v316_v48 = vmul.f32 %v665_v27, %v273_v43  ;;  %v332_v49 = vld [vmem:[#allocation2 + $0x21] sm:$0xff]  ;;  %v300_v1 = vmul.f32 %v659_v22, %v273_v43  ;;  %v284_v26 = vmul.f32 %v657_v21, %v273_v43  ;;  %v335_v43 = vld [vmem:[#allocation2 + $0x51] sm:$0xff] }
  0xa1   : > { %v322_v44 = vadd.f32 %v314_v36, %v305_v35  ;;  %v306_v51 = vadd.f32 %v298_v41, %v281_v40  ;;  %v307_v55 = vadd.f32 %v299_v38, %v282_v47  ;;  %v375_v61 = vmul.f32 %v679_v45, %v332_v49  ;;  %v393_v9 = vld [vmem:[#allocation2 + $0x22] sm:$0xff] }
  0xa2   : > { %v359_v3 = vmul.f32 %v670_v34, %v332_v49  ;;  %v343_v6 = vmul.f32 %v667_v31, %v332_v49  ;;  %v308_v15 = vadd.f32 %v300_v1, %v283_v59  ;;  %v436_v20 = vmul.f32 %v699_v8, %v393_v9  ;;  %v334_v23 = vld [vmem:[#allocation2 + $0x41] sm:$0xff] }
  0xa3   : > { %v349_v52 = vadd.f32 %v341_v37, %v322_v44  ;;  %v323_v58 = vadd.f32 %v315_v42, %v306_v51  ;;  %v324_v0 = vadd.f32 %v316_v48, %v307_v55  ;;  %v377_v24 = vmul.f32 %v679_v45, %v334_v23  ;;  %v394_v37 = vld [vmem:[#allocation2 + $0x32] sm:$0xff] }
  0xa4   : > { %v325_v33 = vadd.f32 %v317_v16, %v308_v15  ;;  %v420_v36 = vmul.f32 %v686_v54, %v393_v9  ;;  %v309_v38 = vadd.f32 %v301_v28, %v284_v26  ;;  %v361_v44 = vmul.f32 %v670_v34, %v334_v23  ;;  %v396_v15 = vld [vmem:[#allocation2 + $0x52] sm:$0xff] }
  0xa5   : > { %v366_v60 = vadd.f32 %v358_v53, %v349_v52  ;;  %v350_v2 = vadd.f32 %v342_v56, %v323_v58  ;;  %v351_v14 = vadd.f32 %v343_v6, %v324_v0  ;;  %v275_v35 = vld [vmem:[#allocation2 + $0x60] sm:$0xff]  ;;  %v404_v46 = vmul.f32 %v683_v50, %v393_v9  ;;  %v276_v58 = vld [vmem:[#allocation2 + $0x70] sm:$0xff] }
  0xa6   : > { %v318_v39 = vmul.f32 %v665_v27, %v275_v35  ;;  %v352_v42 = vadd.f32 %v344_v25, %v325_v33  ;;  %v437_v47 = vmul.f32 %v699_v8, %v394_v37  ;;  %v345_v49 = vmul.f32 %v667_v31, %v334_v23  ;;  %v277_v16 = vld [vmem:[#allocation2 + $0x80] sm:$0xff]  ;;  %v337_v25 = vld [vmem:[#allocation2 + $0x71] sm:$0xff] }
  0xa7   : > { %v383_v7 = vadd.f32 %v375_v61, %v366_v60  ;;  %v367_v11 = vadd.f32 %v359_v3, %v350_v2  ;;  %v368_v32 = vadd.f32 %v360_v12, %v351_v14  ;;  %v285_v51 = vmul.f32 %v657_v21, %v274_v5  ;;  %v395_v60 = vld [vmem:[#allocation2 + $0x42] sm:$0xff] }
  0xa8   : > { %v326_v48 = vadd.f32 %v318_v39, %v309_v38  ;;  %v302_v52 = vmul.f32 %v659_v22, %v275_v35  ;;  %v369_v56 = vadd.f32 %v361_v44, %v352_v42  ;;  %v421_v59 = vmul.f32 %v686_v54, %v394_v37  ;;  %v336_v3 = vld [vmem:[#allocation2 + $0x61] sm:$0xff]  ;;  %v278_v42 = vld [vmem:[#allocation2 + $0x90] sm:$0xff] }
  0xa9   : > { %v410_v13 = vadd.f32 %v402_v57, %v383_v7  ;;  %v384_v17 = vadd.f32 %v376_v4, %v367_v11  ;;  %v385_v41 = vadd.f32 %v377_v24, %v368_v32  ;;  %v378_v57 = vmul.f32 %v679_v45, %v335_v43  ;;  %v397_v38 = vld [vmem:[#allocation2 + $0x62] sm:$0xff] }
  0xaa   : > { %v353_v61 = vadd.f32 %v345_v49, %v326_v48  ;;  %v362_v62 = vmul.f32 %v670_v34, %v335_v43  ;;  %v310_v63 = vadd.f32 %v302_v52, %v285_v51  ;;  %v319_v0 = vmul.f32 %v665_v27, %v276_v58  ;;  %v338_v49 = vld [vmem:[#allocation2 + $0x81] sm:$0xff] }
  0xab   : > { %v427_v19 = vadd.f32 %v419_v10, %v410_v13  ;;  %v411_v30 = vadd.f32 %v403_v18, %v384_v17  ;;  %v412_v55 = vadd.f32 %v404_v46, %v385_v41  ;;  %v386_v2 = vadd.f32 %v378_v57, %v369_v56  ;;  %v398_v56 = vld [vmem:[#allocation2 + $0x72] sm:$0xff] }
  0xac   : > { %v438_v4 = vmul.f32 %v699_v8, %v395_v60  ;;  %v405_v5 = vmul.f32 %v683_v50, %v394_v37  ;;  %v370_v6 = vadd.f32 %v362_v62, %v353_v61  ;;  %v379_v7 = vmul.f32 %v679_v45, %v336_v3 }
  0xad   : > { %v444_v29 = vadd.f32 %v436_v20, %v427_v19  ;;  %v428_v40 = vadd.f32 %v420_v36, %v411_v30  ;;  %v429_v1 = vadd.f32 %v421_v59, %v412_v55  ;;  %v327_v9 = vadd.f32 %v319_v0, %v310_v63 }
  0xae   : > { %v346_v10 = vmul.f32 %v667_v31, %v335_v43  ;;  %v413_v12 = vadd.f32 %v405_v5, %v386_v2  ;;  %v286_v13 = vmul.f32 %v657_v21, %v275_v35  ;;  %v303_v14 = vmul.f32 %v659_v22, %v276_v58  ;;  %v339_v2 = vld [vmem:[#allocation2 + $0x91] sm:$0xff] }
  0xaf   : > { %452 = vxpose.xlu0.b32.start [1/8] (short) (narrow) %v444_v29, 48  ;;  %v445_v53 = vadd.f32 %v437_v47, %v428_v40  ;;  %v446_v11 = vadd.f32 %v438_v4, %v429_v1  ;;  %v422_v17 = vmul.f32 %v686_v54, %v395_v60  ;;  %v387_v18 = vadd.f32 %v379_v7, %v370_v6 }
  0xb0   : > { %v354_v19 = vadd.f32 %v346_v10, %v327_v9  ;;  %v363_v20 = vmul.f32 %v670_v34, %v336_v3  ;;  %v439_v24 = vmul.f32 %v699_v8, %v396_v15  ;;  %v311_v26 = vadd.f32 %v303_v14, %v286_v13 }
  0xb1   : > { %v430_v23 = vadd.f32 %v422_v17, %v413_v12  ;;  %v320_v28 = vmul.f32 %v665_v27, %v277_v16  ;;  %v406_v29 = vmul.f32 %v683_v50, %v395_v60  ;;  %v423_v30 = vmul.f32 %v686_v54, %v396_v15 }
  0xb2   : > { %v371_v33 = vadd.f32 %v363_v20, %v354_v19  ;;  %v380_v35 = vmul.f32 %v679_v45, %v337_v25  ;;  %v347_v36 = vmul.f32 %v667_v31, %v336_v3  ;;  %v287_v40 = vmul.f32 %v657_v21, %v276_v58 }
  0xb3   : > { %v414_v32 = vadd.f32 %v406_v29, %v387_v18  ;;  %v447_v37 = vadd.f32 %v439_v24, %v430_v23  ;;  %v328_v39 = vadd.f32 %v320_v28, %v311_v26  ;;  %v304_v41 = vmul.f32 %v659_v22, %v277_v16 }
  0xb4   : > { %v440_v43 = vmul.f32 %v699_v8, %v397_v38  ;;  %v407_v46 = vmul.f32 %v683_v50, %v396_v15  ;;  %v364_v47 = vmul.f32 %v670_v34, %v337_v25  ;;  %v388_v48 = vadd.f32 %v380_v35, %v371_v33  ;;  %v400_v15 = vld [vmem:[#allocation2 + $0x92] sm:$0xff] }
  0xb5   : > { %v431_v44 = vadd.f32 %v423_v30, %v414_v32  ;;  %v355_v51 = vadd.f32 %v347_v36, %v328_v39  ;;  %v312_v52 = vadd.f32 %v304_v41, %v287_v40  ;;  %v424_v21 = vmul.f32 %v686_v54, %v397_v38 }
  0xb6   : > { %v381_v22 = vmul.f32 %v679_v45, %v338_v49  ;;  %v415_v57 = vadd.f32 %v407_v46, %v388_v48  ;;  %v348_v60 = vmul.f32 %v667_v31, %v337_v25  ;;  %v441_v61 = vmul.f32 %v699_v8, %v398_v56  ;;  %v399_v31 = vld [vmem:[#allocation2 + $0x82] sm:$0xff] }
  0xb7   : > { %453 = vxpose.xlu0.b32.cont [2/8] (short) (narrow) %v445_v53, 48  ;;  %v321_v53 = vmul.f32 %v665_v27, %v278_v42  ;;  %v448_v55 = vadd.f32 %v440_v43, %v431_v44  ;;  %v372_v58 = vadd.f32 %v364_v47, %v355_v51  ;;  %v408_v62 = vmul.f32 %v683_v50, %v397_v38 }
  0xb8   : > { %v432_v63 = vadd.f32 %v424_v21, %v415_v57  ;;  %v365_v27 = vmul.f32 %v670_v34, %v338_v49  ;;  %v425_v3 = vmul.f32 %v686_v54, %v398_v56  ;;  %v382_v7 = vmul.f32 %v679_v45, %v339_v2 }
  0xb9   : > { %v329_v59 = vadd.f32 %v321_v53, %v312_v52  ;;  %v389_v0 = vadd.f32 %v381_v22, %v372_v58  ;;  %v442_v10 = vmul.f32 %v699_v8, %v399_v31  ;;  %v409_v12 = vmul.f32 %v683_v50, %v398_v56 }
  0xba   : > { %v449_v4 = vadd.f32 %v441_v61, %v432_v63  ;;  %v426_v34 = vmul.f32 %v686_v54, %v399_v31  ;;  %v443_v17 = vmul.f32 %v699_v8, %v400_v15 }
  0xbb   : > { %v356_v1 = vadd.f32 %v348_v60, %v329_v59  ;;  %v416_v5 = vadd.f32 %v408_v62, %v389_v0 }
  0xbd   : > { %v373_v6 = vadd.f32 %v365_v27, %v356_v1  ;;  %v433_v9 = vadd.f32 %v425_v3, %v416_v5 }
  0xbf   : > { %454 = vxpose.xlu0.b32.cont [3/8] (short) (narrow) %v446_v11, 48  ;;  %v390_v11 = vadd.f32 %v382_v7, %v373_v6  ;;  %v450_v13 = vadd.f32 %v442_v10, %v433_v9 }
  0xc1   : > { %v417_v14 = vadd.f32 %v409_v12, %v390_v11 }
  0xc3   : > { %v434_v16 = vadd.f32 %v426_v34, %v417_v14 }
  0xc5   : > { %v451_v18 = vadd.f32 %v443_v17, %v434_v16 }
  0xc7   : > { %455 = vxpose.xlu0.b32.cont [4/8] (short) (narrow) %v447_v37, 48 }
  0xcf   : > { %456 = vxpose.xlu0.b32.cont [5/8] (short) (narrow) %v448_v55, 48 }
  0xd7   : > { %457 = vxpose.xlu0.b32.cont [6/8] (short) (narrow) %v449_v4, 48 }
  0xdf   : > { %458 = vxpose.xlu0.b32.cont [7/8] (short) (narrow) %v450_v13, 48 }
  0xe7   : > { %459 = vxpose.xlu0.b32.end [8/8] (short) (narrow) %v451_v18, 48 }
 0x153   : > { %v468_v45 = vpop.trf.xlu0 }
 0x154   : > { %v484_v19 = vpack.c.bf16 %v468_v45, %v468_v45 }
 0x156   : > { %491 = vst.msk [vmem:[%s170_s27] sm:$0xf] %vm490_vm4, %v484_v19 }
 0x15b   : > { %v469_v50 = vpop.trf.xlu0 }
 0x15c   : > { %v485_v20 = vpack.c.bf16 %v469_v50, %v469_v50 }
 0x15e   : > { %492 = vst.msk [vmem:[%s170_s27 + $0x4] sm:$0xf] %vm490_vm4, %v485_v20 }
 0x163   : > { %v470_v54 = vpop.trf.xlu0 }
 0x164   : > { %v486_v23 = vpack.c.bf16 %v470_v54, %v470_v54 }
 0x166   : > { %493 = vst.msk [vmem:[%s170_s27 + $0x8] sm:$0xf] %vm490_vm4, %v486_v23 }
 0x16b   : > { %v471_v8 = vpop.trf.xlu0 }
 0x16c   : > { %v487_v24 = vpack.c.bf16 %v471_v8, %v471_v8 }
 0x16e   : > { %494 = vst.msk [vmem:[%s170_s27 + $0xc] sm:$0xf] %vm490_vm4, %v487_v24 }
 0x173   : > { %v472_v25 = vpop.trf.xlu0 }
 0x174   : > { %v488_v26 = vpack.c.bf16 %v472_v25, %v472_v25 }
 0x176   : > { %495 = vst.msk [vmem:[%s170_s27 + $0x10] sm:$0xf] %vm490_vm4, %v488_v26 }
 0x17b   : > { %v473_v28 = vpop.trf.xlu0 }
 0x17c   : > { %v489_v29 = vpack.c.bf16 %v473_v28, %v473_v28 }
 0x17e   : > { %496 = vst.msk [vmem:[%s170_s27 + $0x14] sm:$0xf] %vm490_vm4, %v489_v29 }
 0x17f PF: > { %s13_s12 = sadd.s32 1, %s592_s12  }
 0x180   : > { %p10_p4 = scmp.ge.s32.totalorder %s13_s12, 4  }
 0x182   :  { %12 = sbr.rel (!%p10_p4) target bundleno = 1 (0x1), region = 64 }

// kernel: cafm_forward.3
= control target key start
LH: loop header
LB: loop body
LE: loop exit
PB: predicated region body
PF: predicated region fallthrough
CT: control target
= control target key end

     0   :  { %s1239_s24 = smov 0   ;;  %s1479_s0 = inlined_call_operand.vmem [shape: bf16[2,8,8,48], index: 0, kind: input, shape index: {}]   ;;  %s1480_s1 = inlined_call_operand.vmem [shape: bf16[2,48,64], index: 1, kind: input, shape index: {}]   ;;  %s1481_s2 = inlined_call_operand.vmem [shape: bf16[9,16,48], index: 2, kind: input, shape index: {}]   ;;  %s1482_s3 = inlined_call_operand.vmem [shape: f32[16,64], index: 3, kind: input, shape index: {}]   ;;  %s1483_s4 = inlined_call_operand.vmem [shape: bf16[16,16], index: 4, kind: input, shape index: {}]   ;;  %s1484_s5 = inlined_call_operand.vmem [shape: f32[16,1], index: 5, kind: input, shape index: {}]   ;;  %s1485_s6 = inlined_call_operand.vmem [shape: f32[16,16], index: 6, kind: input, shape index: {}]   ;;  %s1486_s7 = inlined_call_operand.vmem [shape: f32[2,16,64], index: 7, kind: output, shape index: {}]  }
   0x1 LB: > { %s1043_s25 = sadd.s32 4294967295, %s1195_s24   ;;  %p1047_p0 = scmp.ge.s32.totalorder %s1195_s24, 1  ;;  %s1195_s24 = sphi %s1239_s24, %s17_s24  }
   0x2   : > { %p247_p1 = scmp.lt.s32.totalorder %s1195_s24, 3 }
   0x4   : > { %p248_p2 = pnand %p1047_p0, %p247_p1 }
   0x5   : > { %p284_p3 = scmp.lt.s32.totalorder (!%p248_p2), %s1043_s25, 1 }
   0x6   : > { %251 = sbr.rel (%p248_p2) target bundleno = 879 (0x36f), region = 48 }
   0xb   : > { %vm308_vm0 = vcmask 385024   ;;  %v1197_v0 = vmov 0.0   ;;  %s1490_s25 = smov (!%p284_p3, %s1043_s25), 1  ;;  %vm300_vm1 = vcmask 392192   ;;  %vm735_vm2 = vcmask 523264  }
   0xc   : > { %314 = vst.msk [vmem:[#allocation2 + $0x60] sm:$0x1] %vm308_vm0, %v1197_v0  ;;  %s1152_s26 = smul.u32 24, %s1490_s25  ;;  %s1111_s27 = sshll.u32 %s1490_s25, 5  ;;  %vm302_vm3 = vcmask 386048  }
   0xd   : > { %315 = vst.msk [vmem:[#allocation2 + $0x70] sm:$0x1] %vm308_vm0, %v1197_v0  ;;  %s288_s30 = scalar_lea.vmem %s1479_s0, %s1111_s27 }
   0xe   : > { %301 = vst.msk [vmem:[#allocation2] sm:$0xff] %vm300_vm1, %v1197_v0  ;;  %s1267_s10 = scalar_lea.vmem %s1480_s1, %s1152_s26  ;;  %v1125_v1 = vld [vmem:[%s288_s30] sm:$0xff]   ;;  %v1148_v2 = vld [vmem:[%s288_s30 + $0x8] sm:$0xff]   ;;  %v1149_v7 = vld [vmem:[%s288_s30 + $0x10] sm:$0xff]  }
   0xf   : > { %305 = vst.msk [vmem:[#allocation2 + $0x90] sm:$0xff] %vm300_vm1, %v1197_v0  ;;  %v1151_v3 = vld [vmem:[%s1267_s10 + $0x8] sm:$0xff]   ;;  %v1126_v4 = vunpack.c.l.bf16 %v1125_v1  ;;  %v1127_v5 = vunpack.c.h.bf16 %v1125_v1  ;;  %v1130_v6 = vunpack.c.l.bf16 %v1148_v2  ;;  %v1141_v8 = vld [vmem:[%s1267_s10] sm:$0xff]   ;;  %v1131_v10 = vunpack.c.h.bf16 %v1148_v2  ;;  %v1150_v11 = vld [vmem:[%s288_s30 + $0x18] sm:$0xff]  }
  0x10   : > { %309 = vst.msk [vmem:[#allocation2 + $0x10] sm:$0x1] %vm308_vm0, %v1197_v0  ;;  %v1275_v9 = vunpack.c.l.bf16 %v1151_v3  ;;  %v1134_v12 = vunpack.c.l.bf16 %v1149_v7  ;;  %v1280_v13 = vunpack.c.l.bf16 %v1141_v8  ;;  %v1135_v15 = vunpack.c.h.bf16 %v1149_v7 }
  0x11   : > { %310 = vst.msk [vmem:[#allocation2 + $0x20] sm:$0x1] %vm308_vm0, %v1197_v0  ;;  %v1285_v16 = vunpack.c.h.bf16 %v1151_v3  ;;  %v1138_v17 = vunpack.c.l.bf16 %v1150_v11  ;;  %v1290_v19 = vunpack.c.h.bf16 %v1141_v8  ;;  %v1139_v21 = vunpack.c.h.bf16 %v1150_v11 }
  0x12   : > { %311 = vst.msk [vmem:[#allocation2 + $0x30] sm:$0x1] %vm308_vm0, %v1197_v0  ;;  %v798_v14 = vmul.f32 %v1275_v9, %v1275_v9  ;;  %v733_v18 = vmul.f32 %v1280_v13, %v1280_v13 }
  0x13   : > { %312 = vst.msk [vmem:[#allocation2 + $0x40] sm:$0x1] %vm308_vm0, %v1197_v0  ;;  %v799_v23 = vmul.f32 %v1285_v16, %v1285_v16  ;;  %v734_v24 = vmul.f32 %v1290_v19, %v1290_v19 }
  0x14   : > { %341 = vst.msk [vmem:[#allocation2 + $0x11] sm:$0xff] %vm300_vm1, %v1126_v4  ;;  %v800_v20 = vsel %vm735_vm2, %v798_v14, 0.0  ;;  %v736_v22 = vsel %vm735_vm2, %v733_v18, 0.0 }
  0x15   : > { %342 = vst.msk [vmem:[#allocation2 + $0x21] sm:$0xff] %vm300_vm1, %v1127_v5  ;;  %801 = vadd.xlane.f32.xlu0 %v800_v20  ;;  %737 = vadd.xlane.f32.xlu1 %v736_v22  ;;  %v803_v25 = vsel %vm735_vm2, %v799_v23, 0.0  ;;  %v739_v26 = vsel %vm735_vm2, %v734_v24, 0.0  ;;  %v369_v59 = vld [vmem:[#allocation2] sm:$0xff] }
  0x16   : > { %343 = vst.msk [vmem:[#allocation2 + $0x31] sm:$0xff] %vm300_vm1, %v1130_v6  ;;  %v378_v33 = vld [vmem:[#allocation2 + $0x90] sm:$0xff] }
  0x17   : > { %344 = vst.msk [vmem:[#allocation2 + $0x41] sm:$0xff] %vm300_vm1, %v1131_v10 }
  0x18   : > { %345 = vst.msk [vmem:[#allocation2 + $0x51] sm:$0xff] %vm300_vm1, %v1134_v12 }
  0x19   : > { %346 = vst.msk [vmem:[#allocation2 + $0x61] sm:$0xff] %vm300_vm1, %v1135_v15 }
  0x1a   : > { %347 = vst.msk [vmem:[#allocation2 + $0x71] sm:$0xff] %vm300_vm1, %v1138_v17 }
  0x1b   : > { %348 = vst.msk [vmem:[#allocation2 + $0x81] sm:$0xff] %vm300_vm1, %v1139_v21  ;;  %v370_v61 = vld [vmem:[#allocation2 + $0x10] sm:$0xff] }
  0x1c   : > { %313 = vst.msk [vmem:[#allocation2 + $0x50] sm:$0x1] %vm308_vm0, %v1197_v0  ;;  %v371_v49 = vld [vmem:[#allocation2 + $0x20] sm:$0xff]  ;;  %v488_v63 = vld [vmem:[#allocation2 + $0x11] sm:$0xff]  ;;  %v379_v3 = vpack.c.bf16 %v370_v61, %v369_v59 }
  0x1d   : > { %316 = vst.msk [vmem:[#allocation2 + $0x80] sm:$0x1] %vm308_vm0, %v1197_v0  ;;  %804 = vadd.xlane.f32.xlu0 %v803_v25  ;;  %740 = vadd.xlane.f32.xlu1 %v739_v26  ;;  %v372_v51 = vld [vmem:[#allocation2 + $0x30] sm:$0xff]  ;;  %v1348_v52 = vld [vmem:[#allocation2 + $0x21] sm:$0xff]  ;;  %v419_v11 = vpack.c.bf16 %v371_v49, %v370_v61 }
  0x1e   : > { %317 = vst.msk [vmem:[#allocation2 + $0x19] sm:$0x1] %vm308_vm0, %v1197_v0  ;;  %v373_v32 = vld [vmem:[#allocation2 + $0x40] sm:$0xff]  ;;  %v490_v53 = vld [vmem:[#allocation2 + $0x31] sm:$0xff]  ;;  %v380_v55 = vpack.c.bf16 %v372_v51, %v371_v49  ;;  %v392_v12 = vsel %vm300_vm1, %v379_v3, 0 }
  0x1f   : > { %318 = vst.msk [vmem:[#allocation2 + $0x29] sm:$0x1] %vm308_vm0, %v1197_v0  ;;  %v1327_v36 = vld [vmem:[#allocation2 + $0x41] sm:$0xff]  ;;  %v1329_v37 = vld [vmem:[#allocation2 + $0x51] sm:$0xff]  ;;  %v498_v56 = vpack.c.bf16 %v490_v53, %v1348_v52  ;;  %v420_v57 = vpack.c.bf16 %v373_v32, %v372_v51  ;;  %v432_v21 = vsel %vm300_vm1, %v419_v11, 0 }
  0x20   : > { %v375_v27 = vld [vmem:[#allocation2 + $0x60] sm:$0xff]  ;;  %319 = vst.msk [vmem:[#allocation2 + $0x39] sm:$0x1] %vm308_vm0, %v1197_v0  ;;  %v499_v44 = vpack.c.bf16 %v1329_v37, %v1327_v36  ;;  %v395_v58 = vsel %vm300_vm1, %v380_v55, 0  ;;  %v538_v26 = vpack.c.bf16 %v1327_v36, %v490_v53 }
  0x21   : > { %v1315_v28 = vld [vmem:[#allocation2 + $0x61] sm:$0xff]  ;;  %v376_v29 = vld [vmem:[#allocation2 + $0x70] sm:$0xff]  ;;  %320 = vst.msk [vmem:[#allocation2 + $0x49] sm:$0x1] %vm308_vm0, %v1197_v0  ;;  %v513_v60 = vsel %vm300_vm1, %v498_v56, 0  ;;  %v435_v2 = vsel %vm300_vm1, %v420_v57, 0 }
  0x22   : > { %v1319_v30 = vld [vmem:[#allocation2 + $0x71] sm:$0xff]  ;;  %v382_v31 = vpack.c.bf16 %v376_v29, %v375_v27  ;;  %321 = vst.msk [vmem:[#allocation2 + $0x59] sm:$0x1] %vm308_vm0, %v1197_v0  ;;  %v516_v50 = vsel %vm300_vm1, %v499_v44, 0  ;;  %v539_v24 = vpack.c.bf16 %v1315_v28, %v1329_v37  ;;  %v1117_v53 = vld [vmem:[%s1481_s2 + $0x20] sm:$0xff]  ;;  %v1118_v57 = vld [vmem:[%s1481_s2 + $0x28] sm:$0xff] }
  0x23   : > { %v500_v34 = vpack.c.bf16 %v1319_v30, %v1315_v28  ;;  %322 = vst.msk [vmem:[#allocation2 + $0x69] sm:$0x1] %vm308_vm0, %v1197_v0  ;;  %v374_v35 = vld [vmem:[#allocation2 + $0x50] sm:$0xff]  ;;  %v1121_v61 = vld [vmem:[%s1481_s2 + $0x40] sm:$0xff] }
  0x24   : > { %v401_v38 = vsel %vm300_vm1, %v382_v31, 0  ;;  %323 = vst.msk [vmem:[#allocation2 + $0x79] sm:$0x1] %vm308_vm0, %v1197_v0  ;;  %v377_v39 = vld [vmem:[#allocation2 + $0x80] sm:$0xff]  ;;  %v381_v43 = vpack.c.bf16 %v374_v35, %v373_v32  ;;  %v421_v47 = vpack.c.bf16 %v375_v27, %v374_v35  ;;  %v556_v25 = vsel %vm300_vm1, %v539_v24, 0  ;;  %v1115_v56 = vld [vmem:[%s1481_s2 + $0x10] sm:$0xff] }
  0x25   : > { %v1335_v40 = vsel %vm300_vm1, %v500_v34, 0  ;;  %407 = vmatpush.bf16.xpose.msra.mxu0 %v401_v38  ;;  %324 = vst.msk [vmem:[#allocation2 + $0x89] sm:$0x1] %vm308_vm0, %v1197_v0  ;;  %v459_v41 = vpack.c.bf16 %v378_v33, %v377_v39  ;;  %v422_v42 = vpack.c.bf16 %v377_v39, %v376_v29  ;;  %v553_v27 = vsel %vm300_vm1, %v538_v26, 0  ;;  %v1113_v35 = vld [vmem:[%s1481_s2] sm:$0xff] }
  0x26   : > { %525 = vmatpush.bf16.xpose.msra.mxu3 %v1335_v40  ;;  %303 = vst.msk [vmem:[#allocation2 + $0x8] sm:$0x3] %vm302_vm3, %v1197_v0  ;;  %v398_v48 = vsel %vm300_vm1, %v381_v43, 0  ;;  %v438_v54 = vsel %vm300_vm1, %v421_v47, 0  ;;  %v537_v33 = vpack.c.bf16 %v1348_v52, %v488_v63 }
  0x27   : > { %v469_v45 = vsel %vm300_vm1, %v459_v41, 0  ;;  %v441_v46 = vsel %vm300_vm1, %v422_v42, 0  ;;  %306 = vst.msk [vmem:[#allocation2 + $0x98] sm:$0x3] %vm302_vm3, %v1197_v0  ;;  %v495_v0 = vld [vmem:[#allocation2 + $0x81] sm:$0xff]  ;;  %v608_v41 = vld [vmem:[#allocation2 + $0x32] sm:$0xff] }
  0x28   : > { %475 = vmatpush.bf16.xpose.msra.mxu2 %v469_v45  ;;  %447 = vmatpush.bf16.xpose.msra.mxu1 %v441_v46  ;;  %v540_v6 = vpack.c.bf16 %v495_v0, %v1319_v30  ;;  %v609_v30 = vld [vmem:[#allocation2 + $0x42] sm:$0xff]  ;;  %v550_v37 = vsel %vm300_vm1, %v537_v33, 0  ;;  %v1119_v42 = vld [vmem:[%s1481_s2 + $0x30] sm:$0xff] }
  0x29   : > { %v610_v31 = vld [vmem:[#allocation2 + $0x52] sm:$0xff]  ;;  %v1114_v45 = vld [vmem:[%s1481_s2 + $0x8] sm:$0xff]  ;;  %v656_v46 = vpack.c.bf16 %v609_v30, %v608_v41 }
  0x2a   : > { %v611_v7 = vld [vmem:[#allocation2 + $0x62] sm:$0xff]  ;;  %v559_v18 = vsel %vm300_vm1, %v540_v6, 0  ;;  %v617_v32 = vpack.c.bf16 %v610_v31, %v609_v30 }
  0x2b   : > { %v612_v4 = vld [vmem:[#allocation2 + $0x72] sm:$0xff]  ;;  %v657_v36 = vpack.c.bf16 %v611_v7, %v610_v31  ;;  %v671_v47 = vsel %vm300_vm1, %v656_v46, 0 }
  0x2c   : > { %v613_v1 = vld [vmem:[#allocation2 + $0x82] sm:$0xff]  ;;  %v618_v14 = vpack.c.bf16 %v612_v4, %v611_v7  ;;  %v634_v34 = vsel %vm300_vm1, %v617_v32, 0 }
  0x2d   : > { %408 = vmatpush.bf16.xpose.msra.mxu0 %v398_v48  ;;  %v487_v62 = vld [vmem:[#allocation2 + $0x1] sm:$0xff]  ;;  %v658_v8 = vpack.c.bf16 %v613_v1, %v612_v4 }
  0x2e   : > { %526 = vmatpush.bf16.xpose.msra.mxu3 %v516_v50  ;;  %v497_v5 = vpack.c.bf16 %v488_v63, %v487_v62  ;;  %v496_v10 = vld [vmem:[#allocation2 + $0x91] sm:$0xff]  ;;  %v637_v22 = vsel %vm300_vm1, %v618_v14, 0  ;;  %v605_v49 = vld [vmem:[#allocation2 + $0x2] sm:$0xff] }
  0x2f   : > { %v577_v17 = vpack.c.bf16 %v496_v10, %v495_v0  ;;  %v677_v20 = vsel %vm300_vm1, %v658_v8, 0  ;;  %v614_v29 = vld [vmem:[#allocation2 + $0x92] sm:$0xff] }
  0x30   : > { %476 = vmatpush.bf16.xpose.msra.mxu2 %v401_v38  ;;  %448 = vmatpush.bf16.xpose.msra.mxu1 %v438_v54  ;;  %v510_v15 = vsel %vm300_vm1, %v497_v5, 0  ;;  %v695_v28 = vpack.c.bf16 %v614_v29, %v613_v1  ;;  %v674_v38 = vsel %vm300_vm1, %v657_v36, 0 }
  0x31   : > { %v587_v23 = vsel %vm300_vm1, %v577_v17, 0 }
  0x32   : > { %v705_v39 = vsel %vm300_vm1, %v695_v28, 0 }
  0x35   : > { %409 = vmatpush.bf16.xpose.msra.mxu0 %v395_v58 }
  0x36   : > { %527 = vmatpush.bf16.xpose.msra.mxu3 %v513_v60 }
  0x38   : > { %477 = vmatpush.bf16.xpose.msra.mxu2 %v398_v48  ;;  %449 = vmatpush.bf16.xpose.msra.mxu1 %v435_v2  ;;  %v1116_v48 = vld [vmem:[%s1481_s2 + $0x18] sm:$0xff] }
  0x3d   : > { %410 = vmatpush.bf16.xpose.msra.mxu0 %v392_v12 }
  0x3e   : > { %528 = vmatpush.bf16.xpose.msra.mxu3 %v510_v15 }
  0x40   : > { %478 = vmatpush.bf16.xpose.msra.mxu2 %v395_v58  ;;  %450 = vmatpush.bf16.xpose.msra.mxu1 %v432_v21  ;;  %v1120_v58 = vld [vmem:[%s1481_s2 + $0x38] sm:$0xff] }
  0x44   : > { %1057 = vmatmul.msk.bf16.vlgmr.msra.gmra.mxu0 %vm300_vm1, %v1113_v35 }
  0x45   : > { %565 = vmatpush.bf16.xpose.msrb.mxu0 %v559_v18  ;;  %1072 = vmatmul.msk.bf16.vlgmr.msra.gmra.mxu3 %vm300_vm1, %v1114_v45  ;;  %v884_v45 = vld [vmem:[%s1484_s5] sm:$0xff] }
  0x46   : > { %683 = vmatpush.bf16.xpose.msrb.mxu3 %v677_v20 }
  0x47   : > { %1067 = vmatmul.msk.bf16.vlgmr.msra.gmra.mxu2 %vm300_vm1, %v1119_v42  ;;  %1062 = vmatmul.msk.bf16.vlgmr.msra.gmra.mxu1 %vm300_vm1, %v1116_v48 }
  0x48   : > { %643 = vmatpush.bf16.xpose.msrb.mxu2 %v637_v22  ;;  %593 = vmatpush.bf16.xpose.msrb.mxu1 %v587_v23 }
  0x4d   : > { %566 = vmatpush.bf16.xpose.msrb.mxu0 %v556_v25 }
  0x4e   : > { %684 = vmatpush.bf16.xpose.msrb.mxu3 %v674_v38 }
  0x50   : > { %594 = vmatpush.bf16.xpose.msrb.mxu1 %v1335_v40  ;;  %644 = vmatpush.bf16.xpose.msrb.mxu2 %v634_v34  ;;  %v607_v40 = vld [vmem:[#allocation2 + $0x22] sm:$0xff] }
  0x51   : > { %v616_v43 = vpack.c.bf16 %v608_v41, %v607_v40 }
  0x53   : > { %v631_v44 = vsel %vm300_vm1, %v616_v43, 0 }
  0x55   : > { %567 = vmatpush.bf16.xpose.msrb.mxu0 %v553_v27 }
  0x56   : > { %685 = vmatpush.bf16.xpose.msrb.mxu3 %v671_v47 }
  0x58   : > { %595 = vmatpush.bf16.xpose.msrb.mxu1 %v516_v50  ;;  %645 = vmatpush.bf16.xpose.msrb.mxu2 %v631_v44  ;;  %v606_v50 = vld [vmem:[#allocation2 + $0x12] sm:$0xff] }
  0x59   : > { %v615_v51 = vpack.c.bf16 %v606_v50, %v605_v49  ;;  %v655_v54 = vpack.c.bf16 %v607_v40, %v606_v50  ;;  %v1198_v49 = vmov 0  }
  0x5a   : > { %1163 = vset.pattern.permute.xlu2 %v1198_v49  ;;  %1164 = vset.pattern.permute.xlu0 %v1198_v49 }
  0x5b   : > { %v628_v52 = vsel %vm300_vm1, %v615_v51, 0  ;;  %v668_v55 = vsel %vm300_vm1, %v655_v54, 0  ;;  %888 = vperm.xlu2 %1163, %v884_v45  }
  0x5d   : > { %568 = vmatpush.bf16.xpose.msrb.mxu0 %v550_v37 }
  0x5e   : > { %686 = vmatpush.bf16.xpose.msrb.mxu3 %v668_v55 }
  0x60   : > { %596 = vmatpush.bf16.xpose.msrb.mxu1 %v513_v60  ;;  %646 = vmatpush.bf16.xpose.msrb.mxu2 %v628_v52 }
  0x64   : > { %1077 = vmatmul.msk.bf16.vlgmr.msrb.gmra.mxu0 %vm300_vm1, %v1117_v53 }
  0x65   : > { %711 = vmatpush.bf16.xpose.msra.mxu0 %v705_v39  ;;  %1092 = vmatmul.msk.bf16.vlgmr.msrb.gmra.mxu3 %vm300_vm1, %v1118_v57 }
  0x67   : > { %1087 = vmatmul.msk.bf16.vlgmr.msrb.gmra.mxu2 %vm300_vm1, %v1115_v56  ;;  %1082 = vmatmul.msk.bf16.vlgmr.msrb.gmra.mxu1 %vm300_vm1, %v1120_v58  ;;  %v885_v56 = vld [vmem:[%s1484_s5 + $0x8] sm:$0xff] }
  0x68   : > { %893 = vperm.xlu2 %1163, %v885_v56  }
  0x6d   : > { %712 = vmatpush.bf16.xpose.msra.mxu0 %v637_v22 }
  0x75   : > { %713 = vmatpush.bf16.xpose.msra.mxu0 %v634_v34 }
  0x7d   : > { %714 = vmatpush.bf16.xpose.msra.mxu0 %v631_v44 }
  0x84   : > { %1097 = vmatmul.msk.bf16.vlgmr.msra.gmra.mxu0 %vm300_vm1, %v1121_v61 }
  0x88   : > { %v802_v59 = vpop.xlane.xlu0 %801  ;;  %v738_v60 = vpop.xlane.xlu1 %737 }
  0x89   : > { %1165 = vrsqrt.f32 %v802_v59  ;;  %vm813_vm4 = vcmp.eq.f32.partialorder %v802_v59, inf  ;;  %vm815_vm5 = vcmp.eq.f32.partialorder %v802_v59, 0.0  ;;  %v816_v22 = vand.u32 2147483648, %v802_v59 }
  0x8a   : > { %1167 = vrsqrt.f32 %v738_v60  ;;  %vm749_vm6 = vcmp.eq.f32.partialorder %v738_v60, inf  ;;  %v752_v26 = vand.u32 2147483648, %v738_v60  ;;  %vm751_vm7 = vcmp.eq.f32.partialorder %v738_v60, 0.0 }
  0x8f   : > { %v1166_v62 = vpop.eup %1165 }
  0x90   : > { %v1168_v63 = vpop.eup %1167  ;;  %v807_v0 = vmul.f32 %v1166_v62, %v802_v59  ;;  %v805_v1 = vpop.xlane.xlu0 %804 }
  0x91   : > { %v743_v2 = vmul.f32 %v1168_v63, %v738_v60  ;;  %1169 = vrsqrt.f32 %v805_v1  ;;  %v741_v3 = vpop.xlane.xlu1 %740  ;;  %vm825_vm8 = vcmp.eq.f32.partialorder %v805_v1, inf  ;;  %v828_v39 = vand.u32 2147483648, %v805_v1 }
  0x92   : > { %v808_v4 = vmul.f32 %v1166_v62, %v807_v0  ;;  %1171 = vrsqrt.f32 %v741_v3  ;;  %vm827_vm9 = vcmp.eq.f32.partialorder %v805_v1, 0.0  ;;  %vm761_vm10 = vcmp.eq.f32.partialorder %v741_v3, inf }
  0x93   : > { %v744_v5 = vmul.f32 %v1168_v63, %v743_v2  ;;  %v764_v42 = vand.u32 2147483648, %v741_v3  ;;  %vm763_vm11 = vcmp.eq.f32.partialorder %v741_v3, 0.0 }
  0x94   : > { %v809_v6 = vmul.f32 0.5, %v808_v4 }
  0x95   : > { %v745_v7 = vmul.f32 0.5, %v744_v5 }
  0x96   : > { %v810_v8 = vsub.f32 1.5, %v809_v6 }
  0x97   : > { %v1170_v10 = vpop.eup %1169  ;;  %v746_v11 = vsub.f32 1.5, %v745_v7 }
  0x98   : > { %v1172_v12 = vpop.eup %1171  ;;  %v811_v14 = vmul.f32 %v1166_v62, %v810_v8  ;;  %v819_v15 = vmul.f32 %v1170_v10, %v805_v1 }
  0x99   : > { %v747_v17 = vmul.f32 %v1168_v63, %v746_v11  ;;  %v755_v18 = vmul.f32 %v1172_v12, %v741_v3 }
  0x9a   : > { %v812_v20 = vmul.f32 %v811_v14, %v802_v59  ;;  %v820_v21 = vmul.f32 %v1170_v10, %v819_v15 }
  0x9b   : > { %v748_v23 = vmul.f32 %v747_v17, %v738_v60  ;;  %v756_v24 = vmul.f32 %v1172_v12, %v755_v18 }
  0x9c   : > { %v814_v25 = vsel %vm813_vm4, %v802_v59, %v812_v20  ;;  %v821_v27 = vmul.f32 0.5, %v820_v21 }
  0x9d   : > { %v817_v29 = vsel %vm815_vm5, %v816_v22, %v814_v25  ;;  %v750_v30 = vsel %vm749_vm6, %v738_v60, %v748_v23  ;;  %v757_v31 = vmul.f32 0.5, %v756_v24 }
  0x9e   : > { %v830_v28 = vmax.f32 %v817_v29, 1e-12  ;;  %v753_v32 = vsel %vm751_vm7, %v752_v26, %v750_v30  ;;  %v822_v33 = vsub.f32 1.5, %v821_v27 }
  0x9f   : > { %v1414_v34 = vmax.f32 %v753_v32, 1e-12  ;;  %v758_v35 = vsub.f32 1.5, %v757_v31 }
  0xa0   : > { %1173 = vrcp.f32 %v830_v28  ;;  %v823_v36 = vmul.f32 %v1170_v10, %v822_v33  ;;  %v841_v62 = vand.u32 2147483647, %v830_v28  ;;  %v843_v63 = vand.u32 2147483648, %v830_v28 }
  0xa1   : > { %v759_v37 = vmul.f32 %v1172_v12, %v758_v35  ;;  %1175 = vrcp.f32 %v1414_v34  ;;  %vm837_vm13 = vweird.f32 %v830_v28  ;;  %v779_v24 = vand.u32 2147483648, %v1414_v34 }
  0xa2   : > { %v824_v38 = vmul.f32 %v823_v36, %v805_v1  ;;  %vm842_vm0 = vcmp.eq.f32.partialorder %v841_v62, 8.507059e+37  ;;  %v844_v10 = vor.u32 1.1754944e-38, %v843_v63  ;;  %v777_v27 = vand.u32 2147483647, %v1414_v34 }
  0xa3   : > { %v760_v40 = vmul.f32 %v759_v37, %v741_v3  ;;  %v780_v32 = vor.u32 1.1754944e-38, %v779_v24 }
  0xa4   : > { %v826_v41 = vsel %vm825_vm8, %v805_v1, %v824_v38  ;;  %vm773_vm8 = vweird.f32 %v1414_v34  ;;  %v349_v38 = vld [vmem:[%s1482_s3] sm:$0xff] }
  0xa5   : > { %v829_v43 = vsel %vm827_vm9, %v828_v39, %v826_v41  ;;  %v762_v44 = vsel %vm761_vm10, %v741_v3, %v760_v40 }
  0xa6   : > { %v1174_v46 = vpop.eup %1173  ;;  %v831_v47 = vmax.f32 %v829_v43, 1e-12  ;;  %v765_v48 = vsel %vm763_vm11, %v764_v42, %v762_v44  ;;  %v350_v43 = vld [vmem:[%s1482_s3 + $0x8] sm:$0xff] }
  0xa7   : > { %v767_v50 = vmax.f32 %v765_v48, 1e-12  ;;  %v833_v51 = vmul.f32 %v1174_v46, %v830_v28  ;;  %v1420_v52 = vpop.eup %1175  ;;  %vm838_vm12 = vweird.f32 %v1174_v46 }
  0xa8   : > { %1177 = vrcp.f32 %v831_v47  ;;  %v769_v55 = vmul.f32 %v1420_v52, %v1414_v34  ;;  %v856_v2 = vand.u32 2147483647, %v831_v47  ;;  %vm1427_vm14 = vmor %vm837_vm13, %vm838_vm12  ;;  %v858_v4 = vand.u32 2147483648, %v831_v47 }
  0xa9   : > { %1179 = vrcp.f32 %v767_v50  ;;  %v834_v53 = vsub.f32 1.0, %v833_v51  ;;  %vm852_vm1 = vweird.f32 %v831_v47  ;;  %vm774_vm4 = vweird.f32 %v1420_v52 }
  0xaa   : > { %v770_v61 = vsub.f32 1.0, %v769_v55  ;;  %vm857_vm3 = vcmp.eq.f32.partialorder %v856_v2, 8.507059e+37  ;;  %v859_v15 = vor.u32 1.1754944e-38, %v858_v4  ;;  %v794_v18 = vand.u32 2147483648, %v767_v50  ;;  %vm775_vm10 = vmor %vm773_vm8, %vm774_vm4 }
  0xab   : > { %v835_v54 = vmul.f32 %v1174_v46, %v834_v53  ;;  %vm788_vm7 = vweird.f32 %v767_v50  ;;  %v792_v22 = vand.u32 2147483647, %v767_v50  ;;  %vm778_vm12 = vcmp.eq.f32.partialorder %v777_v27, 8.507059e+37 }
  0xac   : > { %v771_v8 = vmul.f32 %v1420_v52, %v770_v61  ;;  %v795_v30 = vor.u32 1.1754944e-38, %v794_v18  ;;  %vm902_vm13 = vcmask 130048  }
  0xad   : > { %v836_v59 = vadd.f32 %v1174_v46, %v835_v54  ;;  %vm793_vm11 = vcmp.eq.f32.partialorder %v792_v22, 8.507059e+37 }
  0xae   : > { %v1178_v57 = vpop.eup %1177  ;;  %v772_v21 = vadd.f32 %v1420_v52, %v771_v8 }
  0xaf   : > { %v1180_v58 = vpop.eup %1179  ;;  %v848_v60 = vmul.f32 %v1178_v57, %v831_v47  ;;  %v840_v6 = vsel %vm1427_vm14, %v1174_v46, %v836_v59  ;;  %vm853_vm15 = vweird.f32 %v1178_v57 }
  0xb0   : > { %v784_v0 = vmul.f32 %v1180_v58, %v767_v50  ;;  %vm789_vm5 = vweird.f32 %v1180_v58  ;;  %v845_v14 = vsel %vm842_vm0, %v844_v10, %v840_v6  ;;  %vm854_vm6 = vmor %vm852_vm1, %vm853_vm15  ;;  %v776_v28 = vsel %vm775_vm10, %v1420_v52, %v772_v21 }
  0xb1   : > { %v849_v1 = vsub.f32 1.0, %v848_v60  ;;  %vm790_vm9 = vmor %vm788_vm7, %vm789_vm5  ;;  %v846_v25 = vmul.f32 %v1275_v9, %v845_v14  ;;  %v781_v9 = vsel %vm778_vm12, %v780_v32, %v776_v28 }
  0xb2   : > { %v785_v5 = vsub.f32 1.0, %v784_v0  ;;  %v782_v34 = vmul.f32 %v1280_v13, %v781_v9 }
  0xb3   : > { %v850_v7 = vmul.f32 %v1178_v57, %v849_v1  ;;  %v898_v1 = vld [vmem:[%s1485_s6] sm:$0xff] }
  0xb4   : > { %v786_v11 = vmul.f32 %v1180_v58, %v785_v5 }
  0xb5   : > { %v851_v12 = vadd.f32 %v1178_v57, %v850_v7  ;;  %v889_v63 = vpop.permute.xlu2 %888  ;;  %v899_v7 = vld [vmem:[%s1485_s6 + $0x8] sm:$0xff] }
  0xb6   : > { %v787_v17 = vadd.f32 %v1180_v58, %v786_v11 }
  0xb7   : > { %v855_v20 = vsel %vm854_vm6, %v1178_v57, %v851_v12 }
  0xb8   : > { %v860_v23 = vsel %vm857_vm3, %v859_v15, %v855_v20  ;;  %v791_v29 = vsel %vm790_vm9, %v1180_v58, %v787_v17 }
  0xb9   : > { %v861_v26 = vmul.f32 %v1285_v16, %v860_v23  ;;  %v796_v33 = vsel %vm793_vm11, %v795_v30, %v791_v29 }
  0xba   : > { %v797_v16 = vmul.f32 %v1290_v19, %v796_v33 }
  0xbb   : > { %v863_v31 = vpack.c.bf16 %v861_v26, %v846_v25  ;;  %v1122_v25 = vld [vmem:[%s1267_s10 + $0x10] sm:$0xff]  ;;  %s1112_s10 = sshll.u32 %s1490_s25, 4 }
  0xbc   : > { %v862_v36 = vpack.c.bf16 %v797_v16, %v782_v34  ;;  %942 = vmatpush.bf16.msra.mxu2 %v1122_v25  ;;  %v1123_v34 = vld [vmem:[%s1483_s4] sm:$0xff]  ;;  %s298_s27 = scalar_lea.vmem %s1486_s7, %s1112_s10 }
  0xbd   : > { %v868_v35 = vsel %vm735_vm2, %v863_v31, 0 }
  0xbe   : > { %877 = vmatpush.bf16.xpose.msra.mxu1 %v868_v35 }
  0xc1   : > { %v412_v37 = vpop.f32.mrf.mxu0 }
  0xc2   : > { %v417_v39 = vadd.f32 %v412_v37, %v349_v38  ;;  %v894_v5 = vpop.permute.xlu2 %893 }
  0xc4   : > { %v452_v41 = vpop.f32.mrf.mxu1 }
  0xc5   : > { %1098 = vmatmul.msk.bf16.vlgmr.msra.gmra.mxu1 %vm735_vm2, %v862_v36  ;;  %v457_v42 = vadd.f32 %v452_v41, %v417_v39 }
  0xc8   : > { %v530_v13 = vpop.f32.mrf.mxu3 }
  0xc9   : > { %v414_v40 = vpop.f32.mrf.mxu0 }
  0xca   : > { %v480_v44 = vpop.f32.mrf.mxu2  ;;  %v418_v45 = vadd.f32 %v414_v40, %v350_v43 }
  0xcb   : > { %v485_v19 = vadd.f32 %v480_v44, %v457_v42 }
  0xcc   : > { %v454_v46 = vpop.f32.mrf.mxu1 }
  0xcd   : > { %v535_v47 = vadd.f32 %v530_v13, %v485_v19  ;;  %v458_v48 = vadd.f32 %v454_v46, %v418_v45 }
  0xd0   : > { %v532_v53 = vpop.f32.mrf.mxu3 }
  0xd2   : > { %v482_v50 = vpop.f32.mrf.mxu2 }
  0xd3   : > { %v486_v51 = vadd.f32 %v482_v50, %v458_v48 }
  0xd5   : > { %v536_v55 = vadd.f32 %v532_v53, %v486_v51 }
  0xe1   : > { %v570_v49 = vpop.f32.mrf.mxu0 }
  0xe2   : > { %v575_v52 = vadd.f32 %v570_v49, %v535_v47 }
  0xe4   : > { %v598_v54 = vpop.f32.mrf.mxu1 }
  0xe5   : > { %v603_v56 = vadd.f32 %v598_v54, %v575_v52 }
  0xe8   : > { %v688_v36 = vpop.f32.mrf.mxu3 }
  0xe9   : > { %v572_v59 = vpop.f32.mrf.mxu0 }
  0xea   : > { %v648_v57 = vpop.f32.mrf.mxu2  ;;  %v576_v60 = vadd.f32 %v572_v59, %v536_v55 }
  0xeb   : > { %v653_v58 = vadd.f32 %v648_v57, %v603_v56 }
  0xec   : > { %v600_v61 = vpop.f32.mrf.mxu1 }
  0xed   : > { %v604_v62 = vadd.f32 %v600_v61, %v576_v60  ;;  %v693_v39 = vadd.f32 %v688_v36, %v653_v58 }
  0xf0   : > { %v690_v37 = vpop.f32.mrf.mxu3 }
  0xf2   : > { %v650_v33 = vpop.f32.mrf.mxu2 }
  0xf3   : > { %v654_v41 = vadd.f32 %v650_v33, %v604_v62 }
  0xf5   : > { %v694_v44 = vadd.f32 %v690_v37, %v654_v41 }
 0x101   : > { %v716_v38 = vpop.f32.mrf.mxu0 }
 0x102   : > { %v721_v40 = vadd.f32 %v716_v38, %v693_v39 }
 0x109   : > { %v718_v19 = vpop.f32.mrf.mxu0 }
 0x10a   : > { %v722_v45 = vadd.f32 %v718_v19, %v694_v44 }
 0x142   : > { %v879_v0 = vpop.f32.mrf.mxu1 }
 0x143   : > { %v896_v2 = vmul.f32 %v889_v63, %v879_v0 }
 0x145   : > { %v900_v3 = vadd.f32 %v898_v1, %v896_v2 }
 0x147   : > { %v903_v4 = vsel %vm902_vm13, %v900_v3, -inf }
 0x148   : > { %904 = vmax.xlane.f32.xlu0 %v903_v4 }
 0x14a   : > { %v881_v6 = vpop.f32.mrf.mxu1 }
 0x14b   : > { %v897_v8 = vmul.f32 %v894_v5, %v881_v6 }
 0x14d   : > { %v901_v10 = vadd.f32 %v899_v7, %v897_v8 }
 0x14f   : > { %v906_v11 = vsel %vm902_vm13, %v901_v10, -inf }
 0x150   : > { %907 = vmax.xlane.f32.xlu1 %v906_v11 }
 0x1bb   : > { %v905_v12 = vpop.xlane.xlu0 %904 }
 0x1bc   : > { %v909_v14 = vsub.f32 %v900_v3, %v905_v12 }
 0x1be   : > { %v911_v15 = vmul.f32 1.442695, %v909_v14 }
 0x1c0   : > { %1181 = vpow2.f32 %v911_v15 }
 0x1c3   : > { %v908_v17 = vpop.xlane.xlu1 %907 }
 0x1c4   : > { %v910_v18 = vsub.f32 %v901_v10, %v908_v17 }
 0x1c6   : > { %v1182_v20 = vpop.eup %1181  ;;  %v913_v21 = vmul.f32 1.442695, %v910_v18 }
 0x1c7   : > { %v915_v22 = vsel %vm902_vm13, %v1182_v20, 0.0 }
 0x1c8   : > { %1183 = vpow2.f32 %v913_v21  ;;  %916 = vadd.xlane.f32.xlu2 %v915_v22 }
 0x1ce   : > { %v1184_v23 = vpop.eup %1183 }
 0x1cf   : > { %v918_v24 = vsel %vm902_vm13, %v1184_v23, 0.0 }
 0x1d0   : > { %919 = vadd.xlane.f32.xlu0 %v918_v24 }
 0x23b   : > { %v917_v26 = vpop.xlane.xlu2 %916 }
 0x23c   : > { %1185 = vrcp.f32 %v917_v26 }
 0x242   : > { %v1186_v29 = vpop.eup %1185 }
 0x243   : > { %v920_v27 = vpop.xlane.xlu0 %919  ;;  %v923_v31 = vmul.f32 %v1186_v29, %v1182_v20 }
 0x244   : > { %1187 = vrcp.f32 %v920_v27 }
 0x24a   : > { %v1188_v30 = vpop.eup %1187 }
 0x24b   : > { %v924_v28 = vmul.f32 %v1188_v30, %v1184_v23 }
 0x24d   : > { %v925_v32 = vpack.c.bf16 %v924_v28, %v923_v31 }
 0x24f   : > { %1103 = vmatmul.msk.bf16.vlgmr.msra.gmra.mxu2 %vm902_vm13, %v925_v32 }
 0x2d2   : > { %v944_v35 = vpop.f32.mrf.mxu2 }
 0x2da   : > { %v946_v9 = vpop.f32.mrf.mxu2 }
 0x2db   : > { %v951_v16 = vpack.c.bf16 %v946_v9, %v944_v35 }
 0x2dd   : > { %967 = vmatpush.bf16.msra.mxu3 %v951_v16 }
 0x2e0   : > { %1108 = vmatmul.msk.bf16.vlgmr.msra.gmra.mxu3 %vm902_vm13, %v1123_v34 }
 0x363   : > { %v969_v42 = vpop.f32.mrf.mxu3 }
 0x364   : > { %v970_v43 = vadd.f32 %v969_v42, %v721_v40 }
 0x366   : > { %974 = vst.msk [vmem:[%s298_s27] sm:$0xff] %vm735_vm2, %v970_v43 }
 0x36b   : > { %v971_v13 = vpop.f32.mrf.mxu3 }
 0x36c   : > { %v972_v46 = vadd.f32 %v971_v13, %v722_v45 }
 0x36e   : > { %975 = vst.msk [vmem:[%s298_s27 + $0x8] sm:$0xff] %vm735_vm2, %v972_v46 }
 0x36f PF: > { %s17_s24 = sadd.s32 1, %s1195_s24  }
 0x370   : > { %p14_p4 = scmp.ge.s32.totalorder %s17_s24, 4  }
 0x372   :  { %16 = sbr.rel (!%p14_p4) target bundleno = 1 (0x1), region = 83 }

</bundles_post_ra>
